<compile_context>
chip_gen: v5e
topology: v5e:2x2
jax: 0.10.0
libtpu: 0.0.40
codegen_flags: <defaults>
</compile_context>

<pallas_src>
import functools

import numpy as np

import jax
import jax.numpy as jnp
from jax.experimental import pallas as pl
from jax.experimental.pallas import tpu as pltpu


# timm ViT uses 1e-6; torch.nn.LayerNorm default is 1e-5 — set to match the real config.
LN_EPS = 1e-6


# ------------------------------------------------------------------
# BlockSpec helpers
# ------------------------------------------------------------------
def _fullspec(shape):
    """Full-array VMEM block for a grid=(1,) pallas_call."""
    zeros = (0,) * len(shape)
    return pl.BlockSpec(shape, lambda i, zeros=zeros: zeros)


def _const_spec(shape):
    """Constant (never re-DMA'd) block for the (image, layer) encoder grid."""
    zeros = (0,) * len(shape)
    return pl.BlockSpec(shape, lambda b, l, zeros=zeros: zeros)


def _per_image_spec(shape):
    rest = (0,) * (len(shape) - 1)
    return pl.BlockSpec(shape, lambda b, l, rest=rest: (b,) + rest)


def _per_layer_spec(shape):
    rest = (0,) * (len(shape) - 1)
    return pl.BlockSpec(shape, lambda b, l, rest=rest: (l,) + rest)


# ------------------------------------------------------------------
# Encoder kernel: one (image, layer) grid step = one transformer layer on one image.
# Activation is resident in the output block across the layer axis.
# ------------------------------------------------------------------
def _encoder_kernel(patches_ref, add_ref, pw_ref,
                    ln1g_ref, ln1b_ref, qkvw_ref, qkvb_ref, projw_ref, projb_ref,
                    ln2g_ref, ln2b_ref, w1_ref, b1_ref, w2_ref, b2_ref,
                    lnfg_ref, lnfb_ref, out_ref, *,
                    n_layers, heads, head_dim, n_real_tokens, scale, eps):
    layer = pl.program_id(1)
    D = heads * head_dim

    def ln(x, g, b):
        mu = jnp.mean(x, axis=-1, keepdims=True)
        var = jnp.mean((x - mu) ** 2, axis=-1, keepdims=True)
        return (x - mu) * jax.lax.rsqrt(var + eps) * g + b

    # ---- patch embedding only on the first layer step; afterwards the activation
    #      lives in out_ref (same output block index across the "arbitrary" axis).
    @pl.when(layer == 0)
    def _():
        out_ref[0] = (jnp.dot(patches_ref[0], pw_ref[...],
                              preferred_element_type=jnp.float32)
                      + add_ref[...])                                  # (Tp, D) f32

    x = out_ref[0]                                                     # (Tp, D) f32

    # ---- attention: ONE fused QKV matmul, per-head softmax, ONE out-projection ----
    y = ln(x, ln1g_ref[0], ln1b_ref[0])
    qkv = (jnp.dot(y.astype(jnp.bfloat16), qkvw_ref[0],
                   preferred_element_type=jnp.float32) + qkvb_ref[0])  # (Tp, 3D) f32

    # mask padded key columns (tokens >= n_real_tokens); applied AFTER scaling.
    tp = qkv.shape[0]
    key_ok = jax.lax.broadcasted_iota(jnp.int32, (tp, tp), 1) < n_real_tokens

    o_heads = []
    for h in range(heads):                     # static unroll over heads
        q = qkv[:, h * head_dim:(h + 1) * head_dim]
        k = qkv[:, D + h * head_dim:D + (h + 1) * head_dim]
        v = qkv[:, 2 * D + h * head_dim:2 * D + (h + 1) * head_dim]
        s = jax.lax.dot_general(q.astype(jnp.bfloat16), k.astype(jnp.bfloat16),
                                (((1,), (1,)), ((), ())),
                                preferred_element_type=jnp.float32) * scale
        s = jnp.where(key_ok, s, -1e9)
        s = s - jnp.max(s, axis=-1, keepdims=True)
        p = jnp.exp(s)
        p = p * pl.reciprocal(jnp.sum(p, axis=-1, keepdims=True), approx=True)
        o_heads.append(jnp.dot(p.astype(jnp.bfloat16), v.astype(jnp.bfloat16),
                               preferred_element_type=jnp.float32))    # (Tp, dh)
    o = jnp.concatenate(o_heads, axis=-1)                              # (Tp, D)
    attn = (jnp.dot(o.astype(jnp.bfloat16), projw_ref[0],
                    preferred_element_type=jnp.float32) + projb_ref[0])
    x = x + attn

    # ---- MLP sub-block ----
    y = ln(x, ln2g_ref[0], ln2b_ref[0])
    hdn = (jnp.dot(y.astype(jnp.bfloat16), w1_ref[0],
                   preferred_element_type=jnp.float32) + b1_ref[0])
    # TODO(synk): PyTorch nn.GELU default is exact erf; tanh approximation used here.
    hdn = jax.nn.gelu(hdn, approximate=True)
    x = x + (jnp.dot(hdn.astype(jnp.bfloat16), w2_ref[0],
                     preferred_element_type=jnp.float32) + b2_ref[0])

    out_ref[0] = x

    # ---- final LayerNorm on the last layer step ----
    @pl.when(layer == n_layers - 1)
    def _():
        out_ref[0] = ln(out_ref[0], lnfg_ref[...], lnfb_ref[...])


def _stack_encoder_params(enc):
    """Stack per-block weights with a leading layer dim; pre-cast matmul weights to bf16."""
    blocks = enc["blocks"]
    L = len(blocks)
    D = enc["patch_w"].shape[1]

    def st(name):
        return jnp.stack([b[name] for b in blocks], axis=0)

    def bf(a):
        return a.astype(jnp.bfloat16)

    F = blocks[0]["mlp_w1"].shape[1]
    return dict(
        ln1_g=st("ln1_g").reshape(L, 1, D), ln1_b=st("ln1_b").reshape(L, 1, D),
        qkv_w=bf(st("qkv_w")),               qkv_b=st("qkv_b").reshape(L, 1, 3 * D),
        proj_w=bf(st("proj_w")),             proj_b=st("proj_b").reshape(L, 1, D),
        ln2_g=st("ln2_g").reshape(L, 1, D), ln2_b=st("ln2_b").reshape(L, 1, D),
        w1=bf(st("mlp_w1")), b1=st("mlp_b1").reshape(L, 1, F),
        w2=bf(st("mlp_w2")), b2=st("mlp_b2").reshape(L, 1, D),
    )


def encoder_fused(imgs, enc, *, patch_size, heads):
    """One pallas_call encoding ALL stacked images. Returns (BB, Tp, D) tokens (cls at row 0)."""
    BB, C, H, W = imgs.shape
    P = patch_size
    h, w = H // P, W // P
    N = h * w
    T = N + 1
    Tp = ((T + 7) // 8) * 8                 # pad tokens to a sublane multiple of 8
    D = enc["patch_w"].shape[1]
    dh = D // heads
    K = C * P * P
    L = len(enc["blocks"])

    # ---- glue (HBM-side, fused by XLA under jit) ------------------------------
    # patch extraction == Conv2d(C, D, kernel=P, stride=P); zero rows at the cls
    # position (row 0) and at the Tp-T padded rows.
    patches = (imgs.reshape(BB, C, h, P, w, P)
               .transpose(0, 2, 4, 1, 3, 5)
               .reshape(BB, N, K))
    patches = jnp.pad(patches, ((0, 0), (1, 0), (0, 0)))
    patches = jnp.pad(patches, ((0, 0), (0, Tp - T), (0, 0))).astype(jnp.bfloat16)

    # per-row additive term (shared by all images): cls row gets cls_token+pos[0];
    # patch rows get pos[t]+patch_b; padded rows get 0.
    pos = enc["pos_embed"].reshape(T, D)
    cls = enc["cls_token"].reshape(1, D)
    add = jnp.concatenate([cls + pos[:1], pos[1:] + enc["patch_b"][None, :]], axis=0)
    add = jnp.pad(add, ((0, Tp - T), (0, 0)))                            # (Tp, D)

    p = _stack_encoder_params(enc)
    F = p["w1"].shape[-1]
    pw = enc["patch_w"].astype(jnp.bfloat16)
    lnfg = enc["ln_f_g"].reshape(1, D)
    lnfb = enc["ln_f_b"].reshape(1, D)

    args = [patches, add, pw,
            p["ln1_g"], p["ln1_b"], p["qkv_w"], p["qkv_b"], p["proj_w"], p["proj_b"],
            p["ln2_g"], p["ln2_b"], p["w1"], p["b1"], p["w2"], p["b2"],
            lnfg, lnfb]
    in_specs = [
        _per_image_spec((1, Tp, K)),                      # patches
        _const_spec((Tp, D)),                             # add (shared)
        _const_spec((K, D)),                              # patch_w
        _per_layer_spec((1, 1, D)), _per_layer_spec((1, 1, D)),         # ln1 g/b
        _per_layer_spec((1, D, 3 * D)), _per_layer_spec((1, 1, 3 * D)), # qkv w/b
        _per_layer_spec((1, D, D)), _per_layer_spec((1, 1, D)),         # proj w/b
        _per_layer_spec((1, 1, D)), _per_layer_spec((1, 1, D)),         # ln2 g/b
        _per_layer_spec((1, D, F)), _per_layer_spec((1, 1, F)),         # mlp w1/b1
        _per_layer_spec((1, F, D)), _per_layer_spec((1, 1, D)),         # mlp w2/b2
        _const_spec((1, D)), _const_spec((1, D)),                       # final LN g/b
    ]

    kern = functools.partial(_encoder_kernel, n_layers=L, heads=heads, head_dim=dh,
                             n_real_tokens=T, scale=1.0 / float(dh) ** 0.5, eps=LN_EPS)
    # NOTE: D=32 here means the (1, Tp, 32) output store is lane-masked; at real
    # D=384/768 it is a multiple of 128 and stores become unmasked automatically.
    return pl.pallas_call(
        kern,
        out_shape=jax.ShapeDtypeStruct((BB, Tp, D), jnp.float32),
        grid=(BB, L),
        in_specs=in_specs,
        out_specs=pl.BlockSpec((1, Tp, D), lambda b, l: (b, 0, 0)),
        compiler_params=pltpu.CompilerParams(
            dimension_semantics=("parallel", "arbitrary")),
    )(*args)


# ------------------------------------------------------------------
# Fused decoder kernel: prototype mean + projections + cosine matching + bilinear
# upsample (single (N, HW) interpolation matmul) for ALL decoder calls at once.
# Row group order: groups 0..B-1 are the (summed-over-shots) query items, groups
# B..B+S*B-1 are the per-(shot,batch) support items.
# ------------------------------------------------------------------
def _decoder_kernel(x_ref, sm_ref, exp_ref, pw_ref, pb_ref, cw_ref, cb_ref,
                    a_ref, fold_ref, u_ref, mask_ref, fore_ref, ppu_ref, *, logit_scale):
    # prototype = mean over masked-support patch tokens (one per (shot, batch))
    fore_u = jnp.mean(sm_ref[...], axis=1)                                   # (S*B, D)
    ppu = jnp.dot(fore_u, cw_ref[...], preferred_element_type=jnp.float32) + cb_ref[...]
    ppn = ppu * jax.lax.rsqrt(jnp.sum(ppu * ppu, axis=-1, keepdims=True) + 1e-12)

    # expand prototypes to every token row (for query rows this also sums over
    # shots, matching the reference's `q_masks += q_mask` accumulation).
    pexp = jnp.dot(exp_ref[...], ppn, preferred_element_type=jnp.float32)    # (R, D)

    xp = jnp.dot(x_ref[...], pw_ref[...], preferred_element_type=jnp.float32) + pb_ref[...]
    xn = xp * jax.lax.rsqrt(jnp.sum(xp * xp, axis=-1, keepdims=True) + 1e-12)

    l_rows = logit_scale * jnp.sum(xn * pexp, axis=-1, keepdims=True)        # (R, 1)
    # TODO(synk): the Fold/A matmuls implement the (R,1)->(items,N) reshape via tiny
    #             0/1 matmuls; at real N this should become a grid over decoder items.
    logits = jnp.dot(a_ref[...], l_rows * fold_ref[...],
                     preferred_element_type=jnp.float32)                     # (items, N)
    # bilinear upsample as ONE (N, HW) matmul -> lane-dense (items, HW) output
    mask_ref[...] = jnp.dot(logits, u_ref[...], preferred_element_type=jnp.float32)
    fore_ref[...] = fore_u                                                    # fore_features
    ppu_ref[...] = ppu                                                        # fore_features_decoder


def decoder_fused(x_all, sm, dec, *, n_shots, batch, n_tokens_patch, im_size, patch_size):
    S, B, N = n_shots, batch, n_tokens_patch
    H, W = im_size
    h, w = H // patch_size, W // patch_size
    D = dec["proj_patch_w"].shape[0]
    SB = S * B
    Gtot = B + SB            # B summed-query items + S*B support items
    R = Gtot * N
    HW = H * W

    # ---- trace-time constant matrices ----------------------------------------
    rows = np.arange(R)
    grp = rows // N
    pos = rows % N
    Exp = np.zeros((R, SB), np.float32)
    q_sel = grp < B
    q_rows, q_b = rows[q_sel], grp[q_sel]
    for i in range(S):                       # query rows sum over all shot prototypes
        Exp[q_rows, i * B + q_b] = 1.0
    s_rows = rows[~q_sel]
    Exp[s_rows, grp[~q_sel] - B] = 1.0       # support rows use their own prototype
    A = np.zeros((Gtot, R), np.float32)
    A[grp, rows] = 1.0
    Fold = np.zeros((R, N), np.float32)
    Fold[rows, pos] = 1.0

    # exact F.interpolate(mode='bilinear', align_corners=False) as a linear map (N, HW)
    eye = jnp.eye(N, dtype=jnp.float32).reshape(N, 1, h, w)
    U = jax.image.resize(eye, (N, 1, H, W), method="bilinear").reshape(N, HW)

    # Decoder matmuls are negligible compute; left at default f32 operand precision
    # (MXU bf16 passes) with explicit f32 accumulation.
    args = [x_all, sm, jnp.asarray(Exp),
            dec["proj_patch_w"], dec["proj_patch_b"].reshape(1, D),
            dec["proj_cls_w"], dec["proj_cls_b"].reshape(1, D),
            jnp.asarray(A), jnp.asarray(Fold), U]
    out_shapes = (jax.ShapeDtypeStruct((Gtot, HW), jnp.float32),
                  jax.ShapeDtypeStruct((SB, D), jnp.float32),
                  jax.ShapeDtypeStruct((SB, D), jnp.float32))
    return pl.pallas_call(
        functools.partial(_decoder_kernel, logit_scale=10.0),
        out_shape=out_shapes,
        grid=(1,),
        in_specs=[_fullspec(a.shape) for a in args],
        out_specs=tuple(_fullspec(s.shape) for s in out_shapes),
        compiler_params=pltpu.CompilerParams(dimension_semantics=("arbitrary",)),
    )(*args)


# ------------------------------------------------------------------
# Fssegmenter.forward
# ------------------------------------------------------------------
def fssegmenter_forward(query_img, support_imgs, support_masks, params, *, patch_size, heads):
    B, S, C, H, W = support_imgs.shape
    enc, dec = params["encoder"], params["decoder"]
    P = patch_size
    h, w = H // P, W // P
    N = h * w
    T = N + 1
    D = enc["patch_w"].shape[1]
    G = 2 * S + 1

    # support_imgs * support_masks.unsqueeze(2).expand(...)
    support_imgs_masked = support_imgs * support_masks[:, :, None, :, :]

    # ---- ONE encoder pass over query + all masked-support + all support images
    imgs_all = jnp.concatenate(
        [query_img[:, None], support_imgs_masked, support_imgs], axis=1
    ).reshape(B * G, C, H, W)
    feats = encoder_fused(imgs_all, enc, patch_size=P, heads=heads)      # (B*G, Tp, D)
    feats = feats[:, 1:T, :].reshape(B, G, N, D)                          # drop cls + padding

    q_feat = feats[:, 0]                        # (B, N, D)
    s_masked = feats[:, 1:1 + S]                # (B, S, N, D)
    s_feat = feats[:, 1 + S:1 + 2 * S]          # (B, S, N, D)

    # ---- ONE decoder pass: query tokens passed ONCE (no S-fold broadcast) + all
    #      support tokens; shot expansion happens in-kernel via a 0/1 matmul.
    x_all = jnp.concatenate(
        [q_feat.reshape(B * N, D),
         jnp.transpose(s_feat, (1, 0, 2, 3)).reshape(S * B * N, D)], axis=0)
    sm = jnp.transpose(s_masked, (1, 0, 2, 3)).reshape(S * B, N, D)

    masks, fore_u, ppu = decoder_fused(
        x_all, sm, dec, n_shots=S, batch=B, n_tokens_patch=N, im_size=(H, W), patch_size=P)

    # masks[:B]  = sum over shots of the query mask logits (bilinear upsample is linear)
    # masks[B:]  = per-(shot, batch) support mask logits
    q_masks = jax.nn.sigmoid(masks[:B].reshape(B, H, W) / S)                   # (B, H, W)
    s_masks = jax.nn.sigmoid(
        jnp.transpose(masks[B:].reshape(S, B, H, W), (1, 0, 2, 3)))            # (B, S, H, W)
    fore_features = jnp.transpose(fore_u.reshape(S, B, D), (1, 0, 2))          # (B, S, D)
    fore_features_decoder = jnp.transpose(ppu.reshape(S, B, D), (1, 0, 2))     # (B, S, D)
    return q_masks, s_masks, fore_features, fore_features_decoder


# ------------------------------------------------------------------
# Deterministic parameter init (synthetic weights)
# ------------------------------------------------------------------
def init_params(key, *, C, P, D, heads, mlp_dim, n_layers, n_tokens):
    def nrm(k, shape, scale=0.02):
        return scale * jax.random.normal(k, shape, jnp.float32)

    keys = iter(jax.random.split(key, 8 + 8 * n_layers))
    enc = dict(
        patch_w=nrm(next(keys), (C * P * P, D)),
        patch_b=jnp.zeros((D,), jnp.float32),
        cls_token=nrm(next(keys), (1, 1, D)),
        pos_embed=nrm(next(keys), (1, n_tokens, D)),
        blocks=[],
        ln_f_g=jnp.ones((D,), jnp.float32),
        ln_f_b=jnp.zeros((D,), jnp.float32),
    )
    for _ in range(n_layers):
        enc["blocks"].append(dict(
            ln1_g=jnp.ones((D,), jnp.float32), ln1_b=jnp.zeros((D,), jnp.float32),
            qkv_w=nrm(next(keys), (D, 3 * D)), qkv_b=jnp.zeros((3 * D,), jnp.float32),
            proj_w=nrm(next(keys), (D, D)), proj_b=jnp.zeros((D,), jnp.float32),
            ln2_g=jnp.ones((D,), jnp.float32), ln2_b=jnp.zeros((D,), jnp.float32),
            mlp_w1=nrm(next(keys), (D, mlp_dim)), mlp_b1=jnp.zeros((mlp_dim,), jnp.float32),
            mlp_w2=nrm(next(keys), (mlp_dim, D)), mlp_b2=jnp.zeros((D,), jnp.float32),
        ))
    dec = dict(
        proj_patch_w=nrm(next(keys), (D, D)), proj_patch_b=jnp.zeros((D,), jnp.float32),
        proj_cls_w=nrm(next(keys), (D, D)), proj_cls_b=jnp.zeros((D,), jnp.float32),
    )
    return dict(encoder=enc, decoder=dec)


# ------------------------------------------------------------------
if __name__ == "__main__":
    B, S, C, H, W = 2, 2, 3, 16, 16
    P, D, heads, mlp_dim, n_layers = 8, 32, 2, 64, 2
    n_tokens = (H // P) * (W // P) + 1  # 1 cls + 4 patch tokens

    key = jax.random.PRNGKey(0)
    kq, ks, km, kp = jax.random.split(key, 4)
    query_img = jax.random.normal(kq, (B, C, H, W), jnp.float32)
    support_imgs = jax.random.normal(ks, (B, S, C, H, W), jnp.float32)
    support_masks = (jax.random.uniform(km, (B, S, H, W)) > 0.5).astype(jnp.float32)

    params = init_params(kp, C=C, P=P, D=D, heads=heads, mlp_dim=mlp_dim,
                         n_layers=n_layers, n_tokens=n_tokens)

    fwd = jax.jit(functools.partial(fssegmenter_forward, patch_size=P, heads=heads))
    q_masks, s_masks, fore_features, fore_features_dec = fwd(
        query_img, support_imgs, support_masks, params)
    jax.block_until_ready((q_masks, s_masks, fore_features, fore_features_dec))

    assert q_masks.shape == (B, H, W)
    assert s_masks.shape == (B, S, H, W)
    assert fore_features.shape == (B, S, D)
    assert fore_features_dec.shape == (B, S, D)
    assert bool(jnp.all(jnp.isfinite(q_masks)))
    assert bool(jnp.all(jnp.isfinite(s_masks)))
    print("KERNEL_OK")
</pallas_src>

<mosaic_0001>
module attributes {stable_mosaic.version = 11 : i64} {
  func.func @_decoder_kernel(%arg0: i32, %arg1: memref<24x32xf32, #tpu.memory_space<vmem>>, %arg2: memref<4x4x32xf32, #tpu.memory_space<vmem>>, %arg3: memref<24x4xf32, #tpu.memory_space<vmem>>, %arg4: memref<32x32xf32, #tpu.memory_space<vmem>>, %arg5: memref<1x32xf32, #tpu.memory_space<vmem>>, %arg6: memref<32x32xf32, #tpu.memory_space<vmem>>, %arg7: memref<1x32xf32, #tpu.memory_space<vmem>>, %arg8: memref<6x24xf32, #tpu.memory_space<vmem>>, %arg9: memref<24x4xf32, #tpu.memory_space<vmem>>, %arg10: memref<4x256xf32, #tpu.memory_space<vmem>>, %arg11: memref<6x256xf32, #tpu.memory_space<vmem>>, %arg12: memref<4x32xf32, #tpu.memory_space<vmem>>, %arg13: memref<4x32xf32, #tpu.memory_space<vmem>>) attributes {dimension_semantics = [#tpu.dimension_semantics<arbitrary>], iteration_bounds = array<i64: 1>, scalar_prefetch = 0 : i64, scratch_operands = 0 : i64, tpu.core_type = #tpu.core_type<tc>, window_params = [{pipeline_mode = #tpu.pipeline_mode<synchronous>, transform_indices = @transform_0, window_bounds = array<i64: 24, 32>}, {pipeline_mode = #tpu.pipeline_mode<synchronous>, transform_indices = @transform_1, window_bounds = array<i64: 4, 4, 32>}, {pipeline_mode = #tpu.pipeline_mode<synchronous>, transform_indices = @transform_2, window_bounds = array<i64: 24, 4>}, {pipeline_mode = #tpu.pipeline_mode<synchronous>, transform_indices = @transform_3, window_bounds = array<i64: 32, 32>}, {pipeline_mode = #tpu.pipeline_mode<synchronous>, transform_indices = @transform_4, window_bounds = array<i64: 1, 32>}, {pipeline_mode = #tpu.pipeline_mode<synchronous>, transform_indices = @transform_5, window_bounds = array<i64: 32, 32>}, {pipeline_mode = #tpu.pipeline_mode<synchronous>, transform_indices = @transform_6, window_bounds = array<i64: 1, 32>}, {pipeline_mode = #tpu.pipeline_mode<synchronous>, transform_indices = @transform_7, window_bounds = array<i64: 6, 24>}, {pipeline_mode = #tpu.pipeline_mode<synchronous>, transform_indices = @transform_8, window_bounds = array<i64: 24, 4>}, {pipeline_mode = #tpu.pipeline_mode<synchronous>, transform_indices = @transform_9, window_bounds = array<i64: 4, 256>}, {pipeline_mode = #tpu.pipeline_mode<synchronous>, transform_indices = @transform_10, window_bounds = array<i64: 6, 256>}, {pipeline_mode = #tpu.pipeline_mode<synchronous>, transform_indices = @transform_11, window_bounds = array<i64: 4, 32>}, {pipeline_mode = #tpu.pipeline_mode<synchronous>, transform_indices = @transform_12, window_bounds = array<i64: 4, 32>}]} {
    %c0 = arith.constant 0 : index
    %c0_0 = arith.constant 0 : index
    %c0_1 = arith.constant 0 : index
    %0 = vector.load %arg2[%c0, %c0_0, %c0_1] : memref<4x4x32xf32, #tpu.memory_space<vmem>>, vector<4x4x32xf32>
    %cst = arith.constant dense<0.000000e+00> : vector<4x32xf32>
    %1 = vector.multi_reduction <add>, %0, %cst [1] : vector<4x4x32xf32> to vector<4x32xf32>
    %cst_2 = arith.constant 4.000000e+00 : f32
    %2 = vector.broadcast %cst_2 : f32 to vector<4x32xf32>
    %3 = arith.divf %1, %2 : vector<4x32xf32>
    %c0_3 = arith.constant 0 : index
    %c0_4 = arith.constant 0 : index
    %4 = vector.load %arg6[%c0_3, %c0_4] : memref<32x32xf32, #tpu.memory_space<vmem>>, vector<32x32xf32>
    %cst_5 = arith.constant dense<0.000000e+00> : vector<4x32xf32>
    %5 = tpu.matmul %3, %4, %cst_5 {dimension_numbers = #tpu.dot_dimension_numbers<[1], [0], [0], [1], [0, 0, 1, 1], [], []>} : vector<4x32xf32>, vector<32x32xf32>, vector<4x32xf32> -> vector<4x32xf32>
    %c0_6 = arith.constant 0 : index
    %c0_7 = arith.constant 0 : index
    %6 = vector.load %arg7[%c0_6, %c0_7] : memref<1x32xf32, #tpu.memory_space<vmem>>, vector<1x32xf32>
    %7 = vector.broadcast %6 : vector<1x32xf32> to vector<4x32xf32>
    %8 = arith.addf %5, %7 : vector<4x32xf32>
    %9 = arith.mulf %8, %8 : vector<4x32xf32>
    %cst_8 = arith.constant dense<0.000000e+00> : vector<4xf32>
    %10 = vector.multi_reduction <add>, %9, %cst_8 [1] : vector<4x32xf32> to vector<4xf32>
    %11 = vector.shape_cast %10 : vector<4xf32> to vector<4x1xf32>
    %cst_9 = arith.constant 9.99999996E-13 : f32
    %12 = vector.broadcast %cst_9 : f32 to vector<4x1xf32>
    %13 = arith.addf %11, %12 : vector<4x1xf32>
    %14 = math.rsqrt %13 : vector<4x1xf32>
    %15 = vector.broadcast %14 : vector<4x1xf32> to vector<4x32xf32>
    %16 = arith.mulf %8, %15 : vector<4x32xf32>
    %c0_10 = arith.constant 0 : index
    %c0_11 = arith.constant 0 : index
    %17 = vector.load %arg3[%c0_10, %c0_11] : memref<24x4xf32, #tpu.memory_space<vmem>>, vector<24x4xf32>
    %cst_12 = arith.constant dense<0.000000e+00> : vector<24x32xf32>
    %18 = tpu.matmul %17, %16, %cst_12 {dimension_numbers = #tpu.dot_dimension_numbers<[1], [0], [0], [1], [0, 0, 1, 1], [], []>} : vector<24x4xf32>, vector<4x32xf32>, vector<24x32xf32> -> vector<24x32xf32>
    %c0_13 = arith.constant 0 : index
    %c0_14 = arith.constant 0 : index
    %19 = vector.load %arg1[%c0_13, %c0_14] : memref<24x32xf32, #tpu.memory_space<vmem>>, vector<24x32xf32>
    %c0_15 = arith.constant 0 : index
    %c0_16 = arith.constant 0 : index
    %20 = vector.load %arg4[%c0_15, %c0_16] : memref<32x32xf32, #tpu.memory_space<vmem>>, vector<32x32xf32>
    %cst_17 = arith.constant dense<0.000000e+00> : vector<24x32xf32>
    %21 = tpu.matmul %19, %20, %cst_17 {dimension_numbers = #tpu.dot_dimension_numbers<[1], [0], [0], [1], [0, 0, 1, 1], [], []>} : vector<24x32xf32>, vector<32x32xf32>, vector<24x32xf32> -> vector<24x32xf32>
    %c0_18 = arith.constant 0 : index
    %c0_19 = arith.constant 0 : index
    %22 = vector.load %arg5[%c0_18, %c0_19] : memref<1x32xf32, #tpu.memory_space<vmem>>, vector<1x32xf32>
    %23 = vector.broadcast %22 : vector<1x32xf32> to vector<24x32xf32>
    %24 = arith.addf %21, %23 : vector<24x32xf32>
    %25 = arith.mulf %24, %24 : vector<24x32xf32>
    %cst_20 = arith.constant dense<0.000000e+00> : vector<24xf32>
    %26 = vector.multi_reduction <add>, %25, %cst_20 [1] : vector<24x32xf32> to vector<24xf32>
    %27 = vector.shape_cast %26 : vector<24xf32> to vector<24x1xf32>
    %cst_21 = arith.constant 9.99999996E-13 : f32
    %28 = vector.broadcast %cst_21 : f32 to vector<24x1xf32>
    %29 = arith.addf %27, %28 : vector<24x1xf32>
    %30 = math.rsqrt %29 : vector<24x1xf32>
    %31 = vector.broadcast %30 : vector<24x1xf32> to vector<24x32xf32>
    %32 = arith.mulf %24, %31 : vector<24x32xf32>
    %33 = arith.mulf %32, %18 : vector<24x32xf32>
    %cst_22 = arith.constant dense<0.000000e+00> : vector<24xf32>
    %34 = vector.multi_reduction <add>, %33, %cst_22 [1] : vector<24x32xf32> to vector<24xf32>
    %35 = vector.shape_cast %34 : vector<24xf32> to vector<24x1xf32>
    %cst_23 = arith.constant 1.000000e+01 : f32
    %36 = vector.broadcast %cst_23 : f32 to vector<24x1xf32>
    %37 = arith.mulf %36, %35 : vector<24x1xf32>
    %c0_24 = arith.constant 0 : index
    %c0_25 = arith.constant 0 : index
    %38 = vector.load %arg8[%c0_24, %c0_25] : memref<6x24xf32, #tpu.memory_space<vmem>>, vector<6x24xf32>
    %c0_26 = arith.constant 0 : index
    %c0_27 = arith.constant 0 : index
    %39 = vector.load %arg9[%c0_26, %c0_27] : memref<24x4xf32, #tpu.memory_space<vmem>>, vector<24x4xf32>
    %40 = vector.broadcast %37 : vector<24x1xf32> to vector<24x4xf32>
    %41 = arith.mulf %40, %39 : vector<24x4xf32>
    %cst_28 = arith.constant dense<0.000000e+00> : vector<6x4xf32>
    %42 = tpu.matmul %38, %41, %cst_28 {dimension_numbers = #tpu.dot_dimension_numbers<[1], [0], [0], [1], [0, 0, 1, 1], [], []>} : vector<6x24xf32>, vector<24x4xf32>, vector<6x4xf32> -> vector<6x4xf32>
    %c0_29 = arith.constant 0 : index
    %c0_30 = arith.constant 0 : index
    %43 = vector.load %arg10[%c0_29, %c0_30] : memref<4x256xf32, #tpu.memory_space<vmem>>, vector<4x256xf32>
    %cst_31 = arith.constant dense<0.000000e+00> : vector<6x256xf32>
    %44 = tpu.matmul %42, %43, %cst_31 {dimension_numbers = #tpu.dot_dimension_numbers<[1], [0], [0], [1], [0, 0, 1, 1], [], []>} : vector<6x4xf32>, vector<4x256xf32>, vector<6x256xf32> -> vector<6x256xf32>
    %c0_32 = arith.constant 0 : index
    %c0_33 = arith.constant 0 : index
    %45 = vector.load %arg11[%c0_32, %c0_33] : memref<6x256xf32, #tpu.memory_space<vmem>>, vector<6x256xf32>
    tpu.vector_store %arg11[%c0_32, %c0_33], %44 {strides = array<i32>} : memref<6x256xf32, #tpu.memory_space<vmem>>, vector<6x256xf32>,
    %c0_34 = arith.constant 0 : index
    %c0_35 = arith.constant 0 : index
    %46 = vector.load %arg12[%c0_34, %c0_35] : memref<4x32xf32, #tpu.memory_space<vmem>>, vector<4x32xf32>
    tpu.vector_store %arg12[%c0_34, %c0_35], %3 {strides = array<i32>} : memref<4x32xf32, #tpu.memory_space<vmem>>, vector<4x32xf32>,
    %c0_36 = arith.constant 0 : index
    %c0_37 = arith.constant 0 : index
    %47 = vector.load %arg13[%c0_36, %c0_37] : memref<4x32xf32, #tpu.memory_space<vmem>>, vector<4x32xf32>
    tpu.vector_store %arg13[%c0_36, %c0_37], %8 {strides = array<i32>} : memref<4x32xf32, #tpu.memory_space<vmem>>, vector<4x32xf32>,
    return
  }
  func.func @transform_0(%arg0: i32) -> (i32, i32) {
    %c0_i32 = arith.constant 0 : i32
    %c0_i32_0 = arith.constant 0 : i32
    %c0_i32_1 = arith.constant 0 : i32
    return %c0_i32, %c0_i32_0 : i32, i32
  }
  func.func @transform_1(%arg0: i32) -> (i32, i32, i32) {
    %c0_i32 = arith.constant 0 : i32
    %c0_i32_0 = arith.constant 0 : i32
    %c0_i32_1 = arith.constant 0 : i32
    %c0_i32_2 = arith.constant 0 : i32
    return %c0_i32, %c0_i32_0, %c0_i32_1 : i32, i32, i32
  }
  func.func @transform_2(%arg0: i32) -> (i32, i32) {
    %c0_i32 = arith.constant 0 : i32
    %c0_i32_0 = arith.constant 0 : i32
    %c0_i32_1 = arith.constant 0 : i32
    return %c0_i32, %c0_i32_0 : i32, i32
  }
  func.func @transform_3(%arg0: i32) -> (i32, i32) {
    %c0_i32 = arith.constant 0 : i32
    %c0_i32_0 = arith.constant 0 : i32
    %c0_i32_1 = arith.constant 0 : i32
    return %c0_i32, %c0_i32_0 : i32, i32
  }
  func.func @transform_4(%arg0: i32) -> (i32, i32) {
    %c0_i32 = arith.constant 0 : i32
    %c0_i32_0 = arith.constant 0 : i32
    %c0_i32_1 = arith.constant 0 : i32
    return %c0_i32, %c0_i32_0 : i32, i32
  }
  func.func @transform_5(%arg0: i32) -> (i32, i32) {
    %c0_i32 = arith.constant 0 : i32
    %c0_i32_0 = arith.constant 0 : i32
    %c0_i32_1 = arith.constant 0 : i32
    return %c0_i32, %c0_i32_0 : i32, i32
  }
  func.func @transform_6(%arg0: i32) -> (i32, i32) {
    %c0_i32 = arith.constant 0 : i32
    %c0_i32_0 = arith.constant 0 : i32
    %c0_i32_1 = arith.constant 0 : i32
    return %c0_i32, %c0_i32_0 : i32, i32
  }
  func.func @transform_7(%arg0: i32) -> (i32, i32) {
    %c0_i32 = arith.constant 0 : i32
    %c0_i32_0 = arith.constant 0 : i32
    %c0_i32_1 = arith.constant 0 : i32
    return %c0_i32, %c0_i32_0 : i32, i32
  }
  func.func @transform_8(%arg0: i32) -> (i32, i32) {
    %c0_i32 = arith.constant 0 : i32
    %c0_i32_0 = arith.constant 0 : i32
    %c0_i32_1 = arith.constant 0 : i32
    return %c0_i32, %c0_i32_0 : i32, i32
  }
  func.func @transform_9(%arg0: i32) -> (i32, i32) {
    %c0_i32 = arith.constant 0 : i32
    %c0_i32_0 = arith.constant 0 : i32
    %c0_i32_1 = arith.constant 0 : i32
    return %c0_i32, %c0_i32_0 : i32, i32
  }
  func.func @transform_10(%arg0: i32) -> (i32, i32) {
    %c0_i32 = arith.constant 0 : i32
    %c0_i32_0 = arith.constant 0 : i32
    %c0_i32_1 = arith.constant 0 : i32
    return %c0_i32, %c0_i32_0 : i32, i32
  }
  func.func @transform_11(%arg0: i32) -> (i32, i32) {
    %c0_i32 = arith.constant 0 : i32
    %c0_i32_0 = arith.constant 0 : i32
    %c0_i32_1 = arith.constant 0 : i32
    return %c0_i32, %c0_i32_0 : i32, i32
  }
  func.func @transform_12(%arg0: i32) -> (i32, i32) {
    %c0_i32 = arith.constant 0 : i32
    %c0_i32_0 = arith.constant 0 : i32
    %c0_i32_1 = arith.constant 0 : i32
    return %c0_i32, %c0_i32_0 : i32, i32
  }
}

module attributes {stable_mosaic.version = 11 : i64} {
  func.func @_encoder_kernel(%arg0: i32, %arg1: i32, %arg2: memref<1x8x192xbf16, #tpu.memory_space<vmem>>, %arg3: memref<8x32xf32, #tpu.memory_space<vmem>>, %arg4: memref<192x32xbf16, #tpu.memory_space<vmem>>, %arg5: memref<1x1x32xf32, #tpu.memory_space<vmem>>, %arg6: memref<1x1x32xf32, #tpu.memory_space<vmem>>, %arg7: memref<1x32x96xbf16, #tpu.memory_space<vmem>>, %arg8: memref<1x1x96xf32, #tpu.memory_space<vmem>>, %arg9: memref<1x32x32xbf16, #tpu.memory_space<vmem>>, %arg10: memref<1x1x32xf32, #tpu.memory_space<vmem>>, %arg11: memref<1x1x32xf32, #tpu.memory_space<vmem>>, %arg12: memref<1x1x32xf32, #tpu.memory_space<vmem>>, %arg13: memref<1x32x64xbf16, #tpu.memory_space<vmem>>, %arg14: memref<1x1x64xf32, #tpu.memory_space<vmem>>, %arg15: memref<1x64x32xbf16, #tpu.memory_space<vmem>>, %arg16: memref<1x1x32xf32, #tpu.memory_space<vmem>>, %arg17: memref<1x32xf32, #tpu.memory_space<vmem>>, %arg18: memref<1x32xf32, #tpu.memory_space<vmem>>, %arg19: memref<1x8x32xf32, #tpu.memory_space<vmem>>) attributes {dimension_semantics = [#tpu.dimension_semantics<parallel>, #tpu.dimension_semantics<arbitrary>], iteration_bounds = array<i64: 10, 2>, scalar_prefetch = 0 : i64, scratch_operands = 0 : i64, tpu.core_type = #tpu.core_type<tc>, window_params = [{transform_indices = @transform_0, window_bounds = array<i64: 1, 8, 192>}, {pipeline_mode = #tpu.pipeline_mode<synchronous>, transform_indices = @transform_1, window_bounds = array<i64: 8, 32>}, {pipeline_mode = #tpu.pipeline_mode<synchronous>, transform_indices = @transform_2, window_bounds = array<i64: 192, 32>}, {transform_indices = @transform_3, window_bounds = array<i64: 1, 1, 32>}, {transform_indices = @transform_4, window_bounds = array<i64: 1, 1, 32>}, {transform_indices = @transform_5, window_bounds = array<i64: 1, 32, 96>}, {transform_indices = @transform_6, window_bounds = array<i64: 1, 1, 96>}, {transform_indices = @transform_7, window_bounds = array<i64: 1, 32, 32>}, {transform_indices = @transform_8, window_bounds = array<i64: 1, 1, 32>}, {transform_indices = @transform_9, window_bounds = array<i64: 1, 1, 32>}, {transform_indices = @transform_10, window_bounds = array<i64: 1, 1, 32>}, {transform_indices = @transform_11, window_bounds = array<i64: 1, 32, 64>}, {transform_indices = @transform_12, window_bounds = array<i64: 1, 1, 64>}, {transform_indices = @transform_13, window_bounds = array<i64: 1, 64, 32>}, {transform_indices = @transform_14, window_bounds = array<i64: 1, 1, 32>}, {pipeline_mode = #tpu.pipeline_mode<synchronous>, transform_indices = @transform_15, window_bounds = array<i64: 1, 32>}, {pipeline_mode = #tpu.pipeline_mode<synchronous>, transform_indices = @transform_16, window_bounds = array<i64: 1, 32>}, {transform_indices = @transform_17, window_bounds = array<i64: 1, 8, 32>}]} {
    %c0_i32 = arith.constant 0 : i32
    %0 = arith.cmpi eq, %arg1, %c0_i32 : i32
    %1 = arith.extui %0 : i1 to i32
    %c0_i32_0 = arith.constant 0 : i32
    %2 = arith.cmpi ne, %1, %c0_i32_0 : i32
    scf.if %2 {
      %c0_72 = arith.constant 0 : index
      %c0_73 = arith.constant 0 : index
      %c0_74 = arith.constant 0 : index
      %160 = vector.load %arg2[%c0_72, %c0_73, %c0_74] : memref<1x8x192xbf16, #tpu.memory_space<vmem>>, vector<1x8x192xbf16>
      %161 = vector.shape_cast %160 : vector<1x8x192xbf16> to vector<8x192xbf16>
      %c0_75 = arith.constant 0 : index
      %c0_76 = arith.constant 0 : index
      %162 = vector.load %arg4[%c0_75, %c0_76] : memref<192x32xbf16, #tpu.memory_space<vmem>>, vector<192x32xbf16>
      %cst_77 = arith.constant dense<0.000000e+00> : vector<8x32xf32>
      %163 = tpu.matmul %161, %162, %cst_77 {dimension_numbers = #tpu.dot_dimension_numbers<[1], [0], [0], [1], [0, 0, 1, 1], [], []>} : vector<8x192xbf16>, vector<192x32xbf16>, vector<8x32xf32> -> vector<8x32xf32>
      %c0_78 = arith.constant 0 : index
      %c0_79 = arith.constant 0 : index
      %164 = vector.load %arg3[%c0_78, %c0_79] : memref<8x32xf32, #tpu.memory_space<vmem>>, vector<8x32xf32>
      %165 = arith.addf %163, %164 : vector<8x32xf32>
      %c0_80 = arith.constant 0 : index
      %c0_81 = arith.constant 0 : index
      %c0_82 = arith.constant 0 : index
      %166 = vector.load %arg19[%c0_80, %c0_81, %c0_82] : memref<1x8x32xf32, #tpu.memory_space<vmem>>, vector<1x8x32xf32>
      %167 = vector.shape_cast %166 : vector<1x8x32xf32> to vector<8x32xf32>
      %168 = vector.shape_cast %165 : vector<8x32xf32> to vector<1x8x32xf32>
      tpu.vector_store %arg19[%c0_80, %c0_81, %c0_82], %168 {strides = array<i32>} : memref<1x8x32xf32, #tpu.memory_space<vmem>>, vector<1x8x32xf32>,
    } else {
    }
    %c0 = arith.constant 0 : index
    %c0_1 = arith.constant 0 : index
    %c0_2 = arith.constant 0 : index
    %3 = vector.load %arg19[%c0, %c0_1, %c0_2] : memref<1x8x32xf32, #tpu.memory_space<vmem>>, vector<1x8x32xf32>
    %4 = vector.shape_cast %3 : vector<1x8x32xf32> to vector<8x32xf32>
    %c0_3 = arith.constant 0 : index
    %c0_4 = arith.constant 0 : index
    %c0_5 = arith.constant 0 : index
    %5 = vector.load %arg5[%c0_3, %c0_4, %c0_5] : memref<1x1x32xf32, #tpu.memory_space<vmem>>, vector<1x1x32xf32>
    %6 = vector.shape_cast %5 : vector<1x1x32xf32> to vector<1x32xf32>
    %c0_6 = arith.constant 0 : index
    %c0_7 = arith.constant 0 : index
    %c0_8 = arith.constant 0 : index
    %7 = vector.load %arg6[%c0_6, %c0_7, %c0_8] : memref<1x1x32xf32, #tpu.memory_space<vmem>>, vector<1x1x32xf32>
    %8 = vector.shape_cast %7 : vector<1x1x32xf32> to vector<1x32xf32>
    %cst = arith.constant dense<0.000000e+00> : vector<8xf32>
    %9 = vector.multi_reduction <add>, %4, %cst [1] : vector<8x32xf32> to vector<8xf32>
    %10 = vector.shape_cast %9 : vector<8xf32> to vector<8x1xf32>
    %cst_9 = arith.constant 3.200000e+01 : f32
    %11 = vector.broadcast %cst_9 : f32 to vector<8x1xf32>
    %12 = arith.divf %10, %11 : vector<8x1xf32>
    %13 = vector.broadcast %12 : vector<8x1xf32> to vector<8x32xf32>
    %14 = arith.subf %4, %13 : vector<8x32xf32>
    %15 = arith.mulf %14, %14 : vector<8x32xf32>
    %cst_10 = arith.constant dense<0.000000e+00> : vector<8xf32>
    %16 = vector.multi_reduction <add>, %15, %cst_10 [1] : vector<8x32xf32> to vector<8xf32>
    %17 = vector.shape_cast %16 : vector<8xf32> to vector<8x1xf32>
    %cst_11 = arith.constant 3.200000e+01 : f32
    %18 = vector.broadcast %cst_11 : f32 to vector<8x1xf32>
    %19 = arith.divf %17, %18 : vector<8x1xf32>
    %20 = vector.broadcast %12 : vector<8x1xf32> to vector<8x32xf32>
    %21 = arith.subf %4, %20 : vector<8x32xf32>
    %cst_12 = arith.constant 9.99999997E-7 : f32
    %22 = vector.broadcast %cst_12 : f32 to vector<8x1xf32>
    %23 = arith.addf %19, %22 : vector<8x1xf32>
    %24 = math.rsqrt %23 : vector<8x1xf32>
    %25 = vector.broadcast %24 : vector<8x1xf32> to vector<8x32xf32>
    %26 = arith.mulf %21, %25 : vector<8x32xf32>
    %27 = vector.broadcast %6 : vector<1x32xf32> to vector<8x32xf32>
    %28 = arith.mulf %26, %27 : vector<8x32xf32>
    %29 = vector.broadcast %8 : vector<1x32xf32> to vector<8x32xf32>
    %30 = arith.addf %28, %29 : vector<8x32xf32>
    %31 = arith.truncf %30 : vector<8x32xf32> to vector<8x32xbf16>
    %c0_13 = arith.constant 0 : index
    %c0_14 = arith.constant 0 : index
    %c0_15 = arith.constant 0 : index
    %32 = vector.load %arg7[%c0_13, %c0_14, %c0_15] : memref<1x32x96xbf16, #tpu.memory_space<vmem>>, vector<1x32x96xbf16>
    %33 = vector.shape_cast %32 : vector<1x32x96xbf16> to vector<32x96xbf16>
    %cst_16 = arith.constant dense<0.000000e+00> : vector<8x96xf32>
    %34 = tpu.matmul %31, %33, %cst_16 {dimension_numbers = #tpu.dot_dimension_numbers<[1], [0], [0], [1], [0, 0, 1, 1], [], []>} : vector<8x32xbf16>, vector<32x96xbf16>, vector<8x96xf32> -> vector<8x96xf32>
    %c0_17 = arith.constant 0 : index
    %c0_18 = arith.constant 0 : index
    %c0_19 = arith.constant 0 : index
    %35 = vector.load %arg8[%c0_17, %c0_18, %c0_19] : memref<1x1x96xf32, #tpu.memory_space<vmem>>, vector<1x1x96xf32>
    %36 = vector.shape_cast %35 : vector<1x1x96xf32> to vector<1x96xf32>
    %37 = vector.broadcast %36 : vector<1x96xf32> to vector<8x96xf32>
    %38 = arith.addf %34, %37 : vector<8x96xf32>
    %39 = tpu.iota {dimensions = array<i32: 1>} : vector<8x8xi32>
    %c5_i32 = arith.constant 5 : i32
    %40 = vector.broadcast %c5_i32 : i32 to vector<8x8xi32>
    %41 = arith.cmpi slt, %39, %40 : vector<8x8xi32>
    %42 = vector.extract_strided_slice %38 {offsets = [0, 0], sizes = [8, 16], strides = [1, 1]} : vector<8x96xf32> to vector<8x16xf32>
    %43 = vector.extract_strided_slice %38 {offsets = [0, 32], sizes = [8, 16], strides = [1, 1]} : vector<8x96xf32> to vector<8x16xf32>
    %44 = vector.extract_strided_slice %38 {offsets = [0, 64], sizes = [8, 16], strides = [1, 1]} : vector<8x96xf32> to vector<8x16xf32>
    %45 = arith.truncf %42 : vector<8x16xf32> to vector<8x16xbf16>
    %46 = arith.truncf %43 : vector<8x16xf32> to vector<8x16xbf16>
    %cst_20 = arith.constant dense<0.000000e+00> : vector<8x8xf32>
    %47 = tpu.matmul %45, %46, %cst_20 {dimension_numbers = #tpu.dot_dimension_numbers<[1], [1], [0], [0], [0, 0, 1, 0], [], []>} : vector<8x16xbf16>, vector<8x16xbf16>, vector<8x8xf32> -> vector<8x8xf32>
    %cst_21 = arith.constant 2.500000e-01 : f32
    %48 = vector.broadcast %cst_21 : f32 to vector<8x8xf32>
    %49 = arith.mulf %47, %48 : vector<8x8xf32>
    %cst_22 = arith.constant -1.000000e+09 : f32
    %50 = vector.broadcast %cst_22 : f32 to vector<8x8xf32>
    %51 = arith.select %41, %49, %50 : vector<8x8xi1>, vector<8x8xf32>
    %cst_23 = arith.constant dense<0xFF800000> : vector<8xf32>
    %52 = vector.multi_reduction <maximumf>, %51, %cst_23 [1] : vector<8x8xf32> to vector<8xf32>
    %53 = vector.shape_cast %52 : vector<8xf32> to vector<8x1xf32>
    %54 = vector.broadcast %53 : vector<8x1xf32> to vector<8x8xf32>
    %55 = arith.subf %51, %54 : vector<8x8xf32>
    %56 = math.exp %55 : vector<8x8xf32>
    %cst_24 = arith.constant dense<0.000000e+00> : vector<8xf32>
    %57 = vector.multi_reduction <add>, %56, %cst_24 [1] : vector<8x8xf32> to vector<8xf32>
    %58 = vector.shape_cast %57 : vector<8xf32> to vector<8x1xf32>
    %59 = tpu.reciprocal %58 {approx = true} : vector<8x1xf32> -> vector<8x1xf32>
    %60 = vector.broadcast %59 : vector<8x1xf32> to vector<8x8xf32>
    %61 = arith.mulf %56, %60 : vector<8x8xf32>
    %62 = arith.truncf %61 : vector<8x8xf32> to vector<8x8xbf16>
    %63 = arith.truncf %44 : vector<8x16xf32> to vector<8x16xbf16>
    %cst_25 = arith.constant dense<0.000000e+00> : vector<8x16xf32>
    %64 = tpu.matmul %62, %63, %cst_25 {dimension_numbers = #tpu.dot_dimension_numbers<[1], [0], [0], [1], [0, 0, 1, 1], [], []>} : vector<8x8xbf16>, vector<8x16xbf16>, vector<8x16xf32> -> vector<8x16xf32>
    %65 = vector.extract_strided_slice %38 {offsets = [0, 16], sizes = [8, 16], strides = [1, 1]} : vector<8x96xf32> to vector<8x16xf32>
    %66 = vector.extract_strided_slice %38 {offsets = [0, 48], sizes = [8, 16], strides = [1, 1]} : vector<8x96xf32> to vector<8x16xf32>
    %67 = vector.extract_strided_slice %38 {offsets = [0, 80], sizes = [8, 16], strides = [1, 1]} : vector<8x96xf32> to vector<8x16xf32>
    %68 = arith.truncf %65 : vector<8x16xf32> to vector<8x16xbf16>
    %69 = arith.truncf %66 : vector<8x16xf32> to vector<8x16xbf16>
    %cst_26 = arith.constant dense<0.000000e+00> : vector<8x8xf32>
    %70 = tpu.matmul %68, %69, %cst_26 {dimension_numbers = #tpu.dot_dimension_numbers<[1], [1], [0], [0], [0, 0, 1, 0], [], []>} : vector<8x16xbf16>, vector<8x16xbf16>, vector<8x8xf32> -> vector<8x8xf32>
    %cst_27 = arith.constant 2.500000e-01 : f32
    %71 = vector.broadcast %cst_27 : f32 to vector<8x8xf32>
    %72 = arith.mulf %70, %71 : vector<8x8xf32>
    %cst_28 = arith.constant -1.000000e+09 : f32
    %73 = vector.broadcast %cst_28 : f32 to vector<8x8xf32>
    %74 = arith.select %41, %72, %73 : vector<8x8xi1>, vector<8x8xf32>
    %cst_29 = arith.constant dense<0xFF800000> : vector<8xf32>
    %75 = vector.multi_reduction <maximumf>, %74, %cst_29 [1] : vector<8x8xf32> to vector<8xf32>
    %76 = vector.shape_cast %75 : vector<8xf32> to vector<8x1xf32>
    %77 = vector.broadcast %76 : vector<8x1xf32> to vector<8x8xf32>
    %78 = arith.subf %74, %77 : vector<8x8xf32>
    %79 = math.exp %78 : vector<8x8xf32>
    %cst_30 = arith.constant dense<0.000000e+00> : vector<8xf32>
    %80 = vector.multi_reduction <add>, %79, %cst_30 [1] : vector<8x8xf32> to vector<8xf32>
    %81 = vector.shape_cast %80 : vector<8xf32> to vector<8x1xf32>
    %82 = tpu.reciprocal %81 {approx = true} : vector<8x1xf32> -> vector<8x1xf32>
    %83 = vector.broadcast %82 : vector<8x1xf32> to vector<8x8xf32>
    %84 = arith.mulf %79, %83 : vector<8x8xf32>
    %85 = arith.truncf %84 : vector<8x8xf32> to vector<8x8xbf16>
    %86 = arith.truncf %67 : vector<8x16xf32> to vector<8x16xbf16>
    %cst_31 = arith.constant dense<0.000000e+00> : vector<8x16xf32>
    %87 = tpu.matmul %85, %86, %cst_31 {dimension_numbers = #tpu.dot_dimension_numbers<[1], [0], [0], [1], [0, 0, 1, 1], [], []>} : vector<8x8xbf16>, vector<8x16xbf16>, vector<8x16xf32> -> vector<8x16xf32>
    %88 = tpu.concatenate %64, %87 in 1 : vector<8x16xf32>, vector<8x16xf32> -> vector<8x32xf32>
    %89 = arith.truncf %88 : vector<8x32xf32> to vector<8x32xbf16>
    %c0_32 = arith.constant 0 : index
    %c0_33 = arith.constant 0 : index
    %c0_34 = arith.constant 0 : index
    %90 = vector.load %arg9[%c0_32, %c0_33, %c0_34] : memref<1x32x32xbf16, #tpu.memory_space<vmem>>, vector<1x32x32xbf16>
    %91 = vector.shape_cast %90 : vector<1x32x32xbf16> to vector<32x32xbf16>
    %cst_35 = arith.constant dense<0.000000e+00> : vector<8x32xf32>
    %92 = tpu.matmul %89, %91, %cst_35 {dimension_numbers = #tpu.dot_dimension_numbers<[1], [0], [0], [1], [0, 0, 1, 1], [], []>} : vector<8x32xbf16>, vector<32x32xbf16>, vector<8x32xf32> -> vector<8x32xf32>
    %c0_36 = arith.constant 0 : index
    %c0_37 = arith.constant 0 : index
    %c0_38 = arith.constant 0 : index
    %93 = vector.load %arg10[%c0_36, %c0_37, %c0_38] : memref<1x1x32xf32, #tpu.memory_space<vmem>>, vector<1x1x32xf32>
    %94 = vector.shape_cast %93 : vector<1x1x32xf32> to vector<1x32xf32>
    %95 = vector.broadcast %94 : vector<1x32xf32> to vector<8x32xf32>
    %96 = arith.addf %92, %95 : vector<8x32xf32>
    %97 = arith.addf %4, %96 : vector<8x32xf32>
    %c0_39 = arith.constant 0 : index
    %c0_40 = arith.constant 0 : index
    %c0_41 = arith.constant 0 : index
    %98 = vector.load %arg11[%c0_39, %c0_40, %c0_41] : memref<1x1x32xf32, #tpu.memory_space<vmem>>, vector<1x1x32xf32>
    %99 = vector.shape_cast %98 : vector<1x1x32xf32> to vector<1x32xf32>
    %c0_42 = arith.constant 0 : index
    %c0_43 = arith.constant 0 : index
    %c0_44 = arith.constant 0 : index
    %100 = vector.load %arg12[%c0_42, %c0_43, %c0_44] : memref<1x1x32xf32, #tpu.memory_space<vmem>>, vector<1x1x32xf32>
    %101 = vector.shape_cast %100 : vector<1x1x32xf32> to vector<1x32xf32>
    %cst_45 = arith.constant dense<0.000000e+00> : vector<8xf32>
    %102 = vector.multi_reduction <add>, %97, %cst_45 [1] : vector<8x32xf32> to vector<8xf32>
    %103 = vector.shape_cast %102 : vector<8xf32> to vector<8x1xf32>
    %cst_46 = arith.constant 3.200000e+01 : f32
    %104 = vector.broadcast %cst_46 : f32 to vector<8x1xf32>
    %105 = arith.divf %103, %104 : vector<8x1xf32>
    %106 = vector.broadcast %105 : vector<8x1xf32> to vector<8x32xf32>
    %107 = arith.subf %97, %106 : vector<8x32xf32>
    %108 = arith.mulf %107, %107 : vector<8x32xf32>
    %cst_47 = arith.constant dense<0.000000e+00> : vector<8xf32>
    %109 = vector.multi_reduction <add>, %108, %cst_47 [1] : vector<8x32xf32> to vector<8xf32>
    %110 = vector.shape_cast %109 : vector<8xf32> to vector<8x1xf32>
    %cst_48 = arith.constant 3.200000e+01 : f32
    %111 = vector.broadcast %cst_48 : f32 to vector<8x1xf32>
    %112 = arith.divf %110, %111 : vector<8x1xf32>
    %113 = vector.broadcast %105 : vector<8x1xf32> to vector<8x32xf32>
    %114 = arith.subf %97, %113 : vector<8x32xf32>
    %cst_49 = arith.constant 9.99999997E-7 : f32
    %115 = vector.broadcast %cst_49 : f32 to vector<8x1xf32>
    %116 = arith.addf %112, %115 : vector<8x1xf32>
    %117 = math.rsqrt %116 : vector<8x1xf32>
    %118 = vector.broadcast %117 : vector<8x1xf32> to vector<8x32xf32>
    %119 = arith.mulf %114, %118 : vector<8x32xf32>
    %120 = vector.broadcast %99 : vector<1x32xf32> to vector<8x32xf32>
    %121 = arith.mulf %119, %120 : vector<8x32xf32>
    %122 = vector.broadcast %101 : vector<1x32xf32> to vector<8x32xf32>
    %123 = arith.addf %121, %122 : vector<8x32xf32>
    %124 = arith.truncf %123 : vector<8x32xf32> to vector<8x32xbf16>
    %c0_50 = arith.constant 0 : index
    %c0_51 = arith.constant 0 : index
    %c0_52 = arith.constant 0 : index
    %125 = vector.load %arg13[%c0_50, %c0_51, %c0_52] : memref<1x32x64xbf16, #tpu.memory_space<vmem>>, vector<1x32x64xbf16>
    %126 = vector.shape_cast %125 : vector<1x32x64xbf16> to vector<32x64xbf16>
    %cst_53 = arith.constant dense<0.000000e+00> : vector<8x64xf32>
    %127 = tpu.matmul %124, %126, %cst_53 {dimension_numbers = #tpu.dot_dimension_numbers<[1], [0], [0], [1], [0, 0, 1, 1], [], []>} : vector<8x32xbf16>, vector<32x64xbf16>, vector<8x64xf32> -> vector<8x64xf32>
    %c0_54 = arith.constant 0 : index
    %c0_55 = arith.constant 0 : index
    %c0_56 = arith.constant 0 : index
    %128 = vector.load %arg14[%c0_54, %c0_55, %c0_56] : memref<1x1x64xf32, #tpu.memory_space<vmem>>, vector<1x1x64xf32>
    %129 = vector.shape_cast %128 : vector<1x1x64xf32> to vector<1x64xf32>
    %130 = vector.broadcast %129 : vector<1x64xf32> to vector<8x64xf32>
    %131 = arith.addf %127, %130 : vector<8x64xf32>
    %132 = arith.mulf %131, %131 : vector<8x64xf32>
    %133 = arith.mulf %131, %132 : vector<8x64xf32>
    %cst_57 = arith.constant 4.471500e-02 : f32
    %134 = vector.broadcast %cst_57 : f32 to vector<8x64xf32>
    %135 = arith.mulf %134, %133 : vector<8x64xf32>
    %136 = arith.addf %131, %135 : vector<8x64xf32>
    %cst_58 = arith.constant 0.797884583 : f32
    %137 = vector.broadcast %cst_58 : f32 to vector<8x64xf32>
    %138 = arith.mulf %137, %136 : vector<8x64xf32>
    %139 = math.tanh %138 : vector<8x64xf32>
    %cst_59 = arith.constant 1.000000e+00 : f32
    %140 = vector.broadcast %cst_59 : f32 to vector<8x64xf32>
    %141 = arith.addf %140, %139 : vector<8x64xf32>
    %cst_60 = arith.constant 5.000000e-01 : f32
    %142 = vector.broadcast %cst_60 : f32 to vector<8x64xf32>
    %143 = arith.mulf %142, %141 : vector<8x64xf32>
    %144 = arith.mulf %131, %143 : vector<8x64xf32>
    %145 = arith.truncf %144 : vector<8x64xf32> to vector<8x64xbf16>
    %c0_61 = arith.constant 0 : index
    %c0_62 = arith.constant 0 : index
    %c0_63 = arith.constant 0 : index
    %146 = vector.load %arg15[%c0_61, %c0_62, %c0_63] : memref<1x64x32xbf16, #tpu.memory_space<vmem>>, vector<1x64x32xbf16>
    %147 = vector.shape_cast %146 : vector<1x64x32xbf16> to vector<64x32xbf16>
    %cst_64 = arith.constant dense<0.000000e+00> : vector<8x32xf32>
    %148 = tpu.matmul %145, %147, %cst_64 {dimension_numbers = #tpu.dot_dimension_numbers<[1], [0], [0], [1], [0, 0, 1, 1], [], []>} : vector<8x64xbf16>, vector<64x32xbf16>, vector<8x32xf32> -> vector<8x32xf32>
    %c0_65 = arith.constant 0 : index
    %c0_66 = arith.constant 0 : index
    %c0_67 = arith.constant 0 : index
    %149 = vector.load %arg16[%c0_65, %c0_66, %c0_67] : memref<1x1x32xf32, #tpu.memory_space<vmem>>, vector<1x1x32xf32>
    %150 = vector.shape_cast %149 : vector<1x1x32xf32> to vector<1x32xf32>
    %151 = vector.broadcast %150 : vector<1x32xf32> to vector<8x32xf32>
    %152 = arith.addf %148, %151 : vector<8x32xf32>
    %153 = arith.addf %97, %152 : vector<8x32xf32>
    %c0_68 = arith.constant 0 : index
    %c0_69 = arith.constant 0 : index
    %c0_70 = arith.constant 0 : index
    %154 = vector.load %arg19[%c0_68, %c0_69, %c0_70] : memref<1x8x32xf32, #tpu.memory_space<vmem>>, vector<1x8x32xf32>
    %155 = vector.shape_cast %154 : vector<1x8x32xf32> to vector<8x32xf32>
    %156 = vector.shape_cast %153 : vector<8x32xf32> to vector<1x8x32xf32>
    tpu.vector_store %arg19[%c0_68, %c0_69, %c0_70], %156 {strides = array<i32>} : memref<1x8x32xf32, #tpu.memory_space<vmem>>, vector<1x8x32xf32>,
    %c1_i32 = arith.constant 1 : i32
    %157 = arith.cmpi eq, %arg1, %c1_i32 : i32
    %158 = arith.extui %157 : i1 to i32
    %c0_i32_71 = arith.constant 0 : i32
    %159 = arith.cmpi ne, %158, %c0_i32_71 : i32
    scf.if %159 {
      %c0_72 = arith.constant 0 : index
      %c0_73 = arith.constant 0 : index
      %c0_74 = arith.constant 0 : index
      %160 = vector.load %arg19[%c0_72, %c0_73, %c0_74] : memref<1x8x32xf32, #tpu.memory_space<vmem>>, vector<1x8x32xf32>
      %161 = vector.shape_cast %160 : vector<1x8x32xf32> to vector<8x32xf32>
      %c0_75 = arith.constant 0 : index
      %c0_76 = arith.constant 0 : index
      %162 = vector.load %arg17[%c0_75, %c0_76] : memref<1x32xf32, #tpu.memory_space<vmem>>, vector<1x32xf32>
      %c0_77 = arith.constant 0 : index
      %c0_78 = arith.constant 0 : index
      %163 = vector.load %arg18[%c0_77, %c0_78] : memref<1x32xf32, #tpu.memory_space<vmem>>, vector<1x32xf32>
      %cst_79 = arith.constant dense<0.000000e+00> : vector<8xf32>
      %164 = vector.multi_reduction <add>, %161, %cst_79 [1] : vector<8x32xf32> to vector<8xf32>
      %165 = vector.shape_cast %164 : vector<8xf32> to vector<8x1xf32>
      %cst_80 = arith.constant 3.200000e+01 : f32
      %166 = vector.broadcast %cst_80 : f32 to vector<8x1xf32>
      %167 = arith.divf %165, %166 : vector<8x1xf32>
      %168 = vector.broadcast %167 : vector<8x1xf32> to vector<8x32xf32>
      %169 = arith.subf %161, %168 : vector<8x32xf32>
      %170 = arith.mulf %169, %169 : vector<8x32xf32>
      %cst_81 = arith.constant dense<0.000000e+00> : vector<8xf32>
      %171 = vector.multi_reduction <add>, %170, %cst_81 [1] : vector<8x32xf32> to vector<8xf32>
      %172 = vector.shape_cast %171 : vector<8xf32> to vector<8x1xf32>
      %cst_82 = arith.constant 3.200000e+01 : f32
      %173 = vector.broadcast %cst_82 : f32 to vector<8x1xf32>
      %174 = arith.divf %172, %173 : vector<8x1xf32>
      %175 = vector.broadcast %167 : vector<8x1xf32> to vector<8x32xf32>
      %176 = arith.subf %161, %175 : vector<8x32xf32>
      %cst_83 = arith.constant 9.99999997E-7 : f32
      %177 = vector.broadcast %cst_83 : f32 to vector<8x1xf32>
      %178 = arith.addf %174, %177 : vector<8x1xf32>
      %179 = math.rsqrt %178 : vector<8x1xf32>
      %180 = vector.broadcast %179 : vector<8x1xf32> to vector<8x32xf32>
      %181 = arith.mulf %176, %180 : vector<8x32xf32>
      %182 = vector.broadcast %162 : vector<1x32xf32> to vector<8x32xf32>
      %183 = arith.mulf %181, %182 : vector<8x32xf32>
      %184 = vector.broadcast %163 : vector<1x32xf32> to vector<8x32xf32>
      %185 = arith.addf %183, %184 : vector<8x32xf32>
      %c0_84 = arith.constant 0 : index
      %c0_85 = arith.constant 0 : index
      %c0_86 = arith.constant 0 : index
      %186 = vector.load %arg19[%c0_84, %c0_85, %c0_86] : memref<1x8x32xf32, #tpu.memory_space<vmem>>, vector<1x8x32xf32>
      %187 = vector.shape_cast %186 : vector<1x8x32xf32> to vector<8x32xf32>
      %188 = vector.shape_cast %185 : vector<8x32xf32> to vector<1x8x32xf32>
      tpu.vector_store %arg19[%c0_84, %c0_85, %c0_86], %188 {strides = array<i32>} : memref<1x8x32xf32, #tpu.memory_space<vmem>>, vector<1x8x32xf32>,
    } else {
    }
    return
  }
  func.func @transform_0(%arg0: i32, %arg1: i32) -> (i32, i32, i32) {
    %c0_i32 = arith.constant 0 : i32
    %c0_i32_0 = arith.constant 0 : i32
    %c0_i32_1 = arith.constant 0 : i32
    return %arg0, %c0_i32, %c0_i32_0 : i32, i32, i32
  }
  func.func @transform_1(%arg0: i32, %arg1: i32) -> (i32, i32) {
    %c0_i32 = arith.constant 0 : i32
    %c0_i32_0 = arith.constant 0 : i32
    %c0_i32_1 = arith.constant 0 : i32
    return %c0_i32, %c0_i32_0 : i32, i32
  }
  func.func @transform_2(%arg0: i32, %arg1: i32) -> (i32, i32) {
    %c0_i32 = arith.constant 0 : i32
    %c0_i32_0 = arith.constant 0 : i32
    %c0_i32_1 = arith.constant 0 : i32
    return %c0_i32, %c0_i32_0 : i32, i32
  }
  func.func @transform_3(%arg0: i32, %arg1: i32) -> (i32, i32, i32) {
    %c0_i32 = arith.constant 0 : i32
    %c0_i32_0 = arith.constant 0 : i32
    %c0_i32_1 = arith.constant 0 : i32
    return %arg1, %c0_i32, %c0_i32_0 : i32, i32, i32
  }
  func.func @transform_4(%arg0: i32, %arg1: i32) -> (i32, i32, i32) {
    %c0_i32 = arith.constant 0 : i32
    %c0_i32_0 = arith.constant 0 : i32
    %c0_i32_1 = arith.constant 0 : i32
    return %arg1, %c0_i32, %c0_i32_0 : i32, i32, i32
  }
  func.func @transform_5(%arg0: i32, %arg1: i32) -> (i32, i32, i32) {
    %c0_i32 = arith.constant 0 : i32
    %c0_i32_0 = arith.constant 0 : i32
    %c0_i32_1 = arith.constant 0 : i32
    return %arg1, %c0_i32, %c0_i32_0 : i32, i32, i32
  }
  func.func @transform_6(%arg0: i32, %arg1: i32) -> (i32, i32, i32) {
    %c0_i32 = arith.constant 0 : i32
    %c0_i32_0 = arith.constant 0 : i32
    %c0_i32_1 = arith.constant 0 : i32
    return %arg1, %c0_i32, %c0_i32_0 : i32, i32, i32
  }
  func.func @transform_7(%arg0: i32, %arg1: i32) -> (i32, i32, i32) {
    %c0_i32 = arith.constant 0 : i32
    %c0_i32_0 = arith.constant 0 : i32
    %c0_i32_1 = arith.constant 0 : i32
    return %arg1, %c0_i32, %c0_i32_0 : i32, i32, i32
  }
  func.func @transform_8(%arg0: i32, %arg1: i32) -> (i32, i32, i32) {
    %c0_i32 = arith.constant 0 : i32
    %c0_i32_0 = arith.constant 0 : i32
    %c0_i32_1 = arith.constant 0 : i32
    return %arg1, %c0_i32, %c0_i32_0 : i32, i32, i32
  }
  func.func @transform_9(%arg0: i32, %arg1: i32) -> (i32, i32, i32) {
    %c0_i32 = arith.constant 0 : i32
    %c0_i32_0 = arith.constant 0 : i32
    %c0_i32_1 = arith.constant 0 : i32
    return %arg1, %c0_i32, %c0_i32_0 : i32, i32, i32
  }
  func.func @transform_10(%arg0: i32, %arg1: i32) -> (i32, i32, i32) {
    %c0_i32 = arith.constant 0 : i32
    %c0_i32_0 = arith.constant 0 : i32
    %c0_i32_1 = arith.constant 0 : i32
    return %arg1, %c0_i32, %c0_i32_0 : i32, i32, i32
  }
  func.func @transform_11(%arg0: i32, %arg1: i32) -> (i32, i32, i32) {
    %c0_i32 = arith.constant 0 : i32
    %c0_i32_0 = arith.constant 0 : i32
    %c0_i32_1 = arith.constant 0 : i32
    return %arg1, %c0_i32, %c0_i32_0 : i32, i32, i32
  }
  func.func @transform_12(%arg0: i32, %arg1: i32) -> (i32, i32, i32) {
    %c0_i32 = arith.constant 0 : i32
    %c0_i32_0 = arith.constant 0 : i32
    %c0_i32_1 = arith.constant 0 : i32
    return %arg1, %c0_i32, %c0_i32_0 : i32, i32, i32
  }
  func.func @transform_13(%arg0: i32, %arg1: i32) -> (i32, i32, i32) {
    %c0_i32 = arith.constant 0 : i32
    %c0_i32_0 = arith.constant 0 : i32
    %c0_i32_1 = arith.constant 0 : i32
    return %arg1, %c0_i32, %c0_i32_0 : i32, i32, i32
  }
  func.func @transform_14(%arg0: i32, %arg1: i32) -> (i32, i32, i32) {
    %c0_i32 = arith.constant 0 : i32
    %c0_i32_0 = arith.constant 0 : i32
    %c0_i32_1 = arith.constant 0 : i32
    return %arg1, %c0_i32, %c0_i32_0 : i32, i32, i32
  }
  func.func @transform_15(%arg0: i32, %arg1: i32) -> (i32, i32) {
    %c0_i32 = arith.constant 0 : i32
    %c0_i32_0 = arith.constant 0 : i32
    %c0_i32_1 = arith.constant 0 : i32
    return %c0_i32, %c0_i32_0 : i32, i32
  }
  func.func @transform_16(%arg0: i32, %arg1: i32) -> (i32, i32) {
    %c0_i32 = arith.constant 0 : i32
    %c0_i32_0 = arith.constant 0 : i32
    %c0_i32_1 = arith.constant 0 : i32
    return %c0_i32, %c0_i32_0 : i32, i32
  }
  func.func @transform_17(%arg0: i32, %arg1: i32) -> (i32, i32, i32) {
    %c0_i32 = arith.constant 0 : i32
    %c0_i32_0 = arith.constant 0 : i32
    %c0_i32_1 = arith.constant 0 : i32
    return %arg0, %c0_i32, %c0_i32_0 : i32, i32, i32
  }
}

</mosaic_0001>

<bundles_post_ra>
// kernel: fssegmenter_forward.3
= control target key start
LH: loop header
LB: loop body
LE: loop exit
PB: predicated region body
PF: predicated region fallthrough
CT: control target
= control target key end

     0   :  { %v417_v2 = vmov 4.0   ;;  %vm42_vm0 = vcmask 257024   ;;  %vm100_vm1 = vcmask 261120   ;;  %vm94_vm3 = vcmask 1041409   ;;  %s610_s3 = inlined_call_operand.vmem [shape: f32[32,32], index: 3, kind: input, shape index: {}]   ;;  %s611_s5 = inlined_call_operand.vmem [shape: f32[32,32], index: 5, kind: input, shape index: {}]   ;;  %s612_s1 = inlined_call_operand.vmem [shape: f32[4,4,32], index: 1, kind: input, shape index: {}]   ;;  %s613_s0 = inlined_call_operand.vmem [shape: f32[24,32], index: 0, kind: input, shape index: {}]   ;;  %s614_s4 = inlined_call_operand.vmem [shape: f32[1,32], index: 4, kind: input, shape index: {}]   ;;  %s615_s6 = inlined_call_operand.vmem [shape: f32[1,32], index: 6, kind: input, shape index: {}]   ;;  %s616_s11 = inlined_call_operand.vmem [shape: f32[4,32], index: 11, kind: output, shape index: {1}]   ;;  %s617_s12 = inlined_call_operand.vmem [shape: f32[4,32], index: 12, kind: output, shape index: {2}]   ;;  %s618_s2 = inlined_call_operand.vmem [shape: f32[24,4], index: 2, kind: input, shape index: {}]   ;;  %s619_s9 = inlined_call_operand.vmem [shape: f32[4,256], index: 9, kind: input, shape index: {}]   ;;  %s620_s8 = inlined_call_operand.vmem [shape: f32[24,4], index: 8, kind: input, shape index: {}]   ;;  %s621_s7 = inlined_call_operand.vmem [shape: f32[6,24], index: 7, kind: input, shape index: {}]   ;;  %s622_s10 = inlined_call_operand.vmem [shape: f32[6,256], index: 10, kind: output, shape index: {0}]  }
   0x1   :  { %v188_v0 = vld [vmem:[%s610_s3 + $0x18] sm:$0xff]  ;;  %v187_v1 = vld [vmem:[%s610_s3 + $0x10] sm:$0xff]  ;;  %407 = vrcp.f32 %v417_v2  ;;  %v186_v4 = vld [vmem:[%s610_s3 + $0x8] sm:$0xff]  ;;  %vm96_vm4 = vcmask 1042434   ;;  %vm98_vm5 = vcmask 1043459   ;;  %vm152_vm9 = vcmask 1043456  }
   0x2   :  { %214 = vmatpush.msra.mxu2 %v188_v0  ;;  %v85_v3 = vld [vmem:[%s611_s5 + $0x18] sm:$0xff]  ;;  %v185_v5 = vld [vmem:[%s610_s3] sm:$0xff]  ;;  %v84_v6 = vld [vmem:[%s611_s5 + $0x10] sm:$0xff]  ;;  %vm142_vm10 = vcmask 31744  }
   0x3   :  { %115 = vmatpush.msra.mxu0 %v85_v3  ;;  %v83_v7 = vld [vmem:[%s611_s5 + $0x8] sm:$0xff]  ;;  %v38_v8 = vld [vmem:[%s612_s1] sm:$0xf]  ;;  %v39_v9 = vld [vmem:[%s612_s1 + $0x4] sm:$0xf] }
   0x4   :  { %215 = vmatpush.msra.mxu2 %v187_v1  ;;  %v40_v10 = vld [vmem:[%s612_s1 + $0x8] sm:$0xf]  ;;  %v41_v11 = vld [vmem:[%s612_s1 + $0xc] sm:$0xf]  ;;  %v43_v12 = vsel %vm42_vm0, %v38_v8, 0.0  ;;  %v50_v13 = vsel %vm42_vm0, %v39_v9, 0.0 }
   0x5   :  { %116 = vmatpush.msra.mxu0 %v84_v6  ;;  %v182_v14 = vld [vmem:[%s613_s0] sm:$0xff]  ;;  %v44_v16 = vrot.slane %v43_v12, 4  ;;  %v51_v17 = vrot.slane %v50_v13, 4  ;;  %v57_v18 = vsel %vm42_vm0, %v40_v10, 0.0  ;;  %v64_v19 = vsel %vm42_vm0, %v41_v11, 0.0  ;;  %v183_v38 = vld [vmem:[%s613_s0 + $0x8] sm:$0xff] }
   0x6   :  { %216 = vmatpush.msra.mxu2 %v186_v4  ;;  %v82_v15 = vld [vmem:[%s611_s5] sm:$0xff]  ;;  %v58_v21 = vrot.slane %v57_v18, 4  ;;  %v65_v22 = vrot.slane %v64_v19, 4  ;;  %v184_v56 = vld [vmem:[%s613_s0 + $0x10] sm:$0xff] }
   0x7   :  { %v408_v20 = vpop.eup %407  ;;  %117 = vmatpush.msra.mxu0 %v83_v7  ;;  %v45_v23 = vadd.f32 %v44_v16, %v43_v12  ;;  %v52_v24 = vadd.f32 %v51_v17, %v50_v13  ;;  %v405_v58 = vld [vmem:[%s614_s4] ss:$0 sm:$0xff] }
   0x8   :  { %217 = vmatpush.msra.mxu2 %v185_v5  ;;  %v72_v25 = vmul.f32 4.0, %v408_v20  ;;  %v59_v26 = vadd.f32 %v58_v21, %v57_v18  ;;  %v66_v27 = vadd.f32 %v65_v22, %v64_v19  ;;  %vm76_vm2 = vweird.f32 %v408_v20  ;;  %v406_v59 = vld [vmem:[%s615_s6] ss:$0 sm:$0xff]  ;;  %v140_v22 = vld [vmem:[%s618_s2 + $0x8] sm:$0xff] }
   0x9   :  { %396 = vmatmul.msk.f32.vlgmr.msra.gmra.mxu2 %vm100_vm1, %v182_v14  ;;  %118 = vmatpush.msra.mxu0 %v82_v15  ;;  %v46_v28 = vrot.slane %v45_v23, 2  ;;  %v53_v29 = vrot.slane %v52_v24, 2  ;;  %v139_v21 = vld [vmem:[%s618_s2] sm:$0xff] }
   0xa   :  { %v73_v30 = vsub.f32 1.0, %v72_v25  ;;  %v60_v31 = vrot.slane %v59_v26, 2  ;;  %v67_v32 = vrot.slane %v66_v27, 2 }
   0xb   :  { %v47_v33 = vadd.f32 %v46_v28, %v45_v23  ;;  %v54_v34 = vadd.f32 %v53_v29, %v52_v24  ;;  %v141_v23 = vld [vmem:[%s618_s2 + $0x10] sm:$0xff] }
   0xc   :  { %v74_v35 = vmul.f32 %v408_v20, %v73_v30  ;;  %v61_v36 = vadd.f32 %v60_v31, %v59_v26  ;;  %v68_v37 = vadd.f32 %v67_v32, %v66_v27 }
   0xd   :  { %v48_v39 = vrot.slane %v47_v33, 1  ;;  %v55_v40 = vrot.slane %v54_v34, 1 }
   0xe   :  { %v75_v41 = vadd.f32 %v408_v20, %v74_v35  ;;  %v62_v42 = vrot.slane %v61_v36, 1  ;;  %v69_v43 = vrot.slane %v68_v37, 1 }
   0xf   :  { %v49_v44 = vadd.f32 %v48_v39, %v47_v33  ;;  %v56_v45 = vadd.f32 %v55_v40, %v54_v34 }
  0x10   :  { %v77_v46 = vsel %vm76_vm2, %v408_v20, %v75_v41  ;;  %v63_v47 = vadd.f32 %v62_v42, %v61_v36  ;;  %v70_v48 = vadd.f32 %v69_v43, %v68_v37 }
  0x11   :  { %397 = vmatmul.msk.f32.gmra.mxu2 %vm100_vm1, %v183_v38  ;;  %v78_v49 = vmul.f32 %v77_v46, %v49_v44  ;;  %v79_v50 = vmul.f32 %v77_v46, %v56_v45 }
  0x12   :  { %v80_v51 = vmul.f32 %v77_v46, %v63_v47  ;;  %v81_v52 = vmul.f32 %v77_v46, %v70_v48 }
  0x13   :  { %v95_v53 = vsel %vm94_vm3, %v79_v50, %v78_v49 }
  0x14   :  { %v97_v54 = vsel %vm96_vm4, %v80_v51, %v95_v53 }
  0x15   :  { %v99_v55 = vsel %vm98_vm5, %v81_v52, %v97_v54 }
  0x16   :  { %391 = vmatmul.msk.f32.vlgmr.msra.gmra.mxu0 %vm100_vm1, %v99_v55  ;;  %377 = vst.msk [vmem:[%s616_s11] sm:$0xf] %vm42_vm0, %v99_v55 }
  0x19   :  { %398 = vmatmul.msk.f32.gmra.mxu2 %vm100_vm1, %v184_v56 }
  0x8c   :  { %v219_v57 = vpop.f32.mrf.mxu2 }
  0x8d   :  { %v548_v0 = vadd.f32 %v405_v58, %v219_v57 }
  0x8f   :  { %v228_v5 = vmul.f32 %v548_v0, %v548_v0 }
  0x91   :  { %v231_v9 = vsel %vm100_vm1, %v228_v5, 0.0 }
  0x93   :  { %v120_v60 = vpop.f32.mrf.mxu0 }
  0x94   :  { %v222_v61 = vpop.f32.mrf.mxu2  ;;  %v121_v62 = vadd.f32 %v406_v59, %v120_v60 }
  0x95   :  { %v546_v63 = vadd.f32 %v405_v58, %v222_v61 }
  0x96   :  { %378 = vst.msk [vmem:[%s617_s12] sm:$0xf] %vm42_vm0, %v121_v62  ;;  %v123_v1 = vmul.f32 %v121_v62, %v121_v62 }
  0x97   :  { %v229_v2 = vmul.f32 %v546_v63, %v546_v63 }
  0x98   :  { %v124_v3 = vsel %vm42_vm0, %v123_v1, 0.0 }
  0x99   :  { %v234_v4 = vsel %vm100_vm1, %v229_v2, 0.0  ;;  %125 = vadd.xlane.f32.xlu0 %v124_v3  ;;  %v294_v3 = vld [vmem:[%s620_s8 + $0x10] sm:$0xff] }
  0x9a   :  { %235 = vadd.xlane.f32.xlu1 %v234_v4 }
  0x9c   :  { %v225_v6 = vpop.f32.mrf.mxu2 }
  0x9d   :  { %v560_v7 = vadd.f32 %v405_v58, %v225_v6 }
  0x9f   :  { %v230_v8 = vmul.f32 %v560_v7, %v560_v7 }
  0xa1   :  { %v237_v10 = vsel %vm100_vm1, %v230_v8, 0.0 }
  0xa2   :  { %238 = vadd.xlane.f32.xlu0 %v237_v10  ;;  %232 = vadd.xlane.f32.xlu1 %v231_v9  ;;  %v292_v10 = vld [vmem:[%s620_s8] sm:$0xff] }
 0x10c   :  { %v126_v11 = vpop.xlane.xlu0 %125 }
 0x10d   :  { %v127_v12 = vadd.f32 1e-12, %v126_v11  ;;  %v236_v24 = vpop.xlane.xlu1 %235 }
 0x10e   :  { %v241_v33 = vadd.f32 1e-12, %v236_v24 }
 0x10f   :  { %409 = vrsqrt.f32 %v127_v12  ;;  %vm134_vm7 = vweird.f32 %v127_v12 }
 0x110   :  { %vm259_vm2 = vweird.f32 %v241_v33 }
 0x115   :  { %v410_v13 = vpop.eup %409  ;;  %v233_v25 = vpop.xlane.xlu1 %232 }
 0x116   :  { %v129_v14 = vmul.f32 %v410_v13, %v127_v12  ;;  %vm135_vm6 = vweird.f32 %v410_v13  ;;  %v240_v26 = vadd.f32 1e-12, %v233_v25  ;;  %v239_v28 = vpop.xlane.xlu0 %238 }
 0x117   :  { %vm136_vm8 = vmor %vm134_vm7, %vm135_vm6  ;;  %v242_v30 = vadd.f32 1e-12, %v239_v28 }
 0x118   :  { %v130_v15 = vmul.f32 %v410_v13, %v129_v14  ;;  %411 = vrsqrt.f32 %v240_v26  ;;  %vm249_vm11 = vweird.f32 %v240_v26 }
 0x119   :  { %413 = vrsqrt.f32 %v242_v30  ;;  %vm269_vm14 = vweird.f32 %v242_v30 }
 0x11a   :  { %v131_v16 = vmul.f32 0.5, %v130_v15  ;;  %415 = vrsqrt.f32 %v241_v33 }
 0x11c   :  { %v132_v17 = vsub.f32 1.5, %v131_v16 }
 0x11e   :  { %v133_v18 = vmul.f32 %v410_v13, %v132_v17  ;;  %v412_v27 = vpop.eup %411 }
 0x11f   :  { %v244_v29 = vmul.f32 %v412_v27, %v240_v26  ;;  %v414_v35 = vpop.eup %413  ;;  %vm250_vm12 = vweird.f32 %v412_v27 }
 0x120   :  { %v137_v19 = vsel %vm136_vm8, %v410_v13, %v133_v18  ;;  %v264_v36 = vmul.f32 %v414_v35, %v242_v30  ;;  %vm251_vm13 = vmor %vm249_vm11, %vm250_vm12  ;;  %v416_v38 = vpop.eup %415  ;;  %vm270_vm15 = vweird.f32 %v414_v35  ;;  %v291_v13 = vld [vmem:[%s621_s7] sm:$0x3f] }
 0x121   :  { %v138_v20 = vmul.f32 %v137_v19, %v121_v62  ;;  %v245_v31 = vmul.f32 %v412_v27, %v244_v29  ;;  %v254_v41 = vmul.f32 %v416_v38, %v241_v33  ;;  %vm271_vm0 = vmor %vm269_vm14, %vm270_vm15  ;;  %vm260_vm3 = vweird.f32 %v416_v38 }
 0x122   :  { %v265_v39 = vmul.f32 %v414_v35, %v264_v36  ;;  %vm261_vm4 = vmor %vm259_vm2, %vm260_vm3 }
 0x123   :  { %392 = vmatpush.msk.msra.mxu1 %vm152_vm9, %v138_v20  ;;  %v246_v32 = vmul.f32 0.5, %v245_v31  ;;  %v255_v46 = vmul.f32 %v416_v38, %v254_v41 }
 0x124   :  { %393 = vmatmul.msk.f32.vlgmr.msra.gmra.mxu1 %vm142_vm10, %v139_v21  ;;  %v266_v43 = vmul.f32 0.5, %v265_v39 }
 0x125   :  { %v247_v34 = vsub.f32 1.5, %v246_v32  ;;  %v256_v49 = vmul.f32 0.5, %v255_v46 }
 0x126   :  { %v267_v48 = vsub.f32 1.5, %v266_v43 }
 0x127   :  { %v248_v37 = vmul.f32 %v412_v27, %v247_v34  ;;  %v257_v52 = vsub.f32 1.5, %v256_v49 }
 0x128   :  { %v268_v51 = vmul.f32 %v414_v35, %v267_v48 }
 0x129   :  { %v252_v40 = vsel %vm251_vm13, %v412_v27, %v248_v37  ;;  %v258_v54 = vmul.f32 %v416_v38, %v257_v52 }
 0x12a   :  { %v273_v42 = vmul.f32 %v252_v40, %v548_v0  ;;  %v272_v53 = vsel %vm271_vm0, %v414_v35, %v268_v51  ;;  %v322_v0 = vld [vmem:[%s619_s9] sm:$0xff] }
 0x12b   :  { %v275_v55 = vmul.f32 %v272_v53, %v560_v7  ;;  %v262_v58 = vsel %vm261_vm4, %v416_v38, %v258_v54  ;;  %324 = vst [vmem:[#allocation1] ss:$2 sm:$0xff] %v322_v0  ;;  %v293_v7 = vld [vmem:[%s620_s8 + $0x8] sm:$0xff] }
 0x12c   :  { %394 = vmatmul.msk.f32.gmra.mxu1 %vm142_vm10, %v140_v22  ;;  %v274_v60 = vmul.f32 %v262_v58, %v546_v63 }
 0x132   :  { %v326_v1 = vld.sshfl [vmem:[#allocation1 + $0x8] sm:$0xff pattern:$0x75316420]  ;;  %v325_v14 = vld.sshfl [vmem:[#allocation1] sm:$0xff pattern:$0x75316420] }
 0x133   :  { %402 = vmatpush.msk.msrb.mxu0 %vm152_vm9, %v326_v1 }
 0x134   :  { %395 = vmatmul.msk.f32.gmra.mxu1 %vm142_vm10, %v141_v23 }
 0x1a1   :  { %v173_v44 = vpop.f32.mrf.mxu1 }
 0x1a2   :  { %v276_v45 = vmul.f32 %v273_v42, %v173_v44 }
 0x1a4   :  { %v279_v47 = vsel %vm100_vm1, %v276_v45, 0.0 }
 0x1a5   :  { %280 = vadd.xlane.f32.xlu0 %v279_v47 }
 0x1a9   :  { %v176_v50 = vpop.f32.mrf.mxu1 }
 0x1aa   :  { %v277_v61 = vmul.f32 %v274_v60, %v176_v50 }
 0x1ac   :  { %v282_v62 = vsel %vm100_vm1, %v277_v61, 0.0 }
 0x1b1   :  { %v179_v56 = vpop.f32.mrf.mxu1 }
 0x1b2   :  { %v278_v57 = vmul.f32 %v275_v55, %v179_v56 }
 0x1b4   :  { %v285_v59 = vsel %vm100_vm1, %v278_v57, 0.0  ;;  %vm298_vm1 = vcmask 195584  }
 0x1b5   :  { %286 = vadd.xlane.f32.xlu2 %v285_v59 }
 0x1bd   :  { %283 = vadd.xlane.f32.xlu2 %v282_v62 }
 0x218   :  { %v281_v63 = vpop.xlane.xlu0 %280 }
 0x219   :  { %v288_v8 = vmul.f32 10.0, %v281_v63 }
 0x21b   :  { %v295_v12 = vmul.f32 %v292_v10, %v288_v8 }
 0x228   :  { %v287_v2 = vpop.xlane.xlu2 %286 }
 0x229   :  { %v290_v4 = vmul.f32 10.0, %v287_v2 }
 0x22b   :  { %v297_v5 = vmul.f32 %v294_v3, %v290_v4 }
 0x22d   :  { %315 = vmatpush.msra.mxu3 %v297_v5 }
 0x230   :  { %v284_v6 = vpop.xlane.xlu2 %283 }
 0x231   :  { %v289_v9 = vmul.f32 10.0, %v284_v6 }
 0x233   :  { %v296_v11 = vmul.f32 %v293_v7, %v289_v9 }
 0x235   :  { %316 = vmatpush.msra.mxu3 %v296_v11 }
 0x237   :  { %317 = vmatpush.msra.mxu3 %v295_v12 }
 0x238   :  { %399 = vmatmul.msk.f32.vlgmr.msra.gmra.mxu3 %vm298_vm1, %v291_v13 }
 0x239   :  { %400 = vmatpush.msk.msrb.mxu3 %vm152_vm9, %v325_v14 }
 0x2bb   :  { %v319_v15 = vpop.f32.mrf.mxu3 }
 0x2bc   :  { %401 = vmatmul.msk.f32.vlgmr.msrb.gmra.mxu3 %vm142_vm10, %v319_v15  ;;  %403 = vmatmul.msk.f32.vlgmr.msrb.gmra.mxu0 %vm142_vm10, %v319_v15 }
 0x339   :  { %v371_v16 = vpop.f32.mrf.mxu0 }
 0x33a   :  { %375 = vst [vmem:[%s622_s10 + $0x8] sm:$0x3f] %v371_v16 }
 0x33f   :  { %v351_v17 = vpop.f32.mrf.mxu3 }
 0x340   :  { %374 = vst [vmem:[%s622_s10] sm:$0x3f] %v351_v17 }

// kernel: fssegmenter_forward.2
= control target key start
LH: loop header
LB: loop body
LE: loop exit
PB: predicated region body
PF: predicated region fallthrough
CT: control target
= control target key end

     0   :  { %s1847_s24 = smov 0   ;;  %s1849_s25 = smov 0   ;;  %s2102_s0 = inlined_call_operand.vmem [shape: bf16[10,8,192], index: 0, kind: input, shape index: {}]   ;;  %s2103_s1 = inlined_call_operand.vmem [shape: f32[8,32], index: 1, kind: input, shape index: {}]   ;;  %s2104_s2 = inlined_call_operand.vmem [shape: bf16[192,32], index: 2, kind: input, shape index: {}]   ;;  %s2105_s3 = inlined_call_operand.vmem [shape: f32[2,1,32], index: 3, kind: input, shape index: {}]   ;;  %s2106_s4 = inlined_call_operand.vmem [shape: f32[2,1,32], index: 4, kind: input, shape index: {}]   ;;  %s2107_s5 = inlined_call_operand.vmem [shape: bf16[2,32,96], index: 5, kind: input, shape index: {}]   ;;  %s2108_s6 = inlined_call_operand.vmem [shape: f32[2,1,96], index: 6, kind: input, shape index: {}]   ;;  %s2109_s7 = inlined_call_operand.vmem [shape: bf16[2,32,32], index: 7, kind: input, shape index: {}]   ;;  %s2110_s8 = inlined_call_operand.vmem [shape: f32[2,1,32], index: 8, kind: input, shape index: {}]   ;;  %s2111_s9 = inlined_call_operand.vmem [shape: f32[2,1,32], index: 9, kind: input, shape index: {}]   ;;  %s2112_s10 = inlined_call_operand.vmem [shape: f32[2,1,32], index: 10, kind: input, shape index: {}]   ;;  %s2113_s11 = inlined_call_operand.vmem [shape: bf16[2,32,64], index: 11, kind: input, shape index: {}]   ;;  %s2114_s12 = inlined_call_operand.vmem [shape: f32[2,1,64], index: 12, kind: input, shape index: {}]   ;;  %s2115_s13 = inlined_call_operand.vmem [shape: bf16[2,64,32], index: 13, kind: input, shape index: {}]   ;;  %s2116_s14 = inlined_call_operand.vmem [shape: f32[2,1,32], index: 14, kind: input, shape index: {}]   ;;  %s2117_s15 = inlined_call_operand.vmem [shape: f32[1,32], index: 15, kind: input, shape index: {}]   ;;  %s2118_s16 = inlined_call_operand.vmem [shape: f32[1,32], index: 16, kind: input, shape index: {}]   ;;  %s2119_s17 = inlined_call_operand.vmem [shape: f32[10,8,32], index: 17, kind: output, shape index: {}]  }
   0x1   :  { %2125 = sst [smem:[#allocation8_spill]] %s2102_s0  ;;  %s1851_s26 = smov 0  }
   0x2   :  { %2126 = sst [smem:[#allocation9_spill]] %s2103_s1  ;;  %s1853_s27 = smov 0  }
   0x3   :  { %2127 = sst [smem:[#allocation10_spill]] %s2104_s2  ;;  %s1855_s28 = smov 0  }
   0x4   :  { %2128 = sst [smem:[#allocation11_spill]] %s2106_s4 }
   0x5   :  { %2129 = sst [smem:[#allocation12_spill]] %s2107_s5 }
   0x6   :  { %2130 = sst [smem:[#allocation13_spill]] %s2109_s7 }
   0x7   :  { %2131 = sst [smem:[#allocation14_spill]] %s2117_s15 }
   0x8   :  { %2132 = sst [smem:[#allocation15_spill]] %s2118_s16 }
   0x9   :  { %2133 = sst [smem:[#allocation16_spill]] %s2119_s17 }
   0xa LB: > { %2134 = sst [smem:[#allocation2_spill]] %s1732_s24  ;;  %s36_s29 = sadd.s32 1, %s1740_s26  ;;  %s1748_s28 = sphi %s1855_s28, %s27_s28   ;;  %s1744_s27 = sphi %s1853_s27, %s2163_s27   ;;  %s1740_s26 = sphi %s1851_s26, %s2162_s26   ;;  %s1736_s25 = sphi %s1849_s25, %s2161_s25   ;;  %s1732_s24 = sphi %s1847_s24, %s2160_s24  }
   0xb   : > { %2135 = sst [smem:[#allocation3_spill]] %s1740_s26  ;;  %s39_s0 = sadd.s32 1, %s1744_s27 }
   0xc   : > { %2136 = sst [smem:[#allocation4_spill]] %s1744_s27  ;;  %p37_p0 = scmp.ge.s32.totalorder %s36_s29, 2 }
   0xd   : > { %2137 = sst [smem:[#allocation5_spill]] %s1748_s28  ;;  %p1495_p1 = scmp.ge.s32.totalorder %s1748_s28, 1 }
   0xe   : > { %p603_p2 = scmp.lt.s32.totalorder %s1748_s28, 21  ;;  %s2165_s29 = smov (%p37_p0, %s36_s29), 0 }
   0xf   : > { %2138 = sst [smem:[#allocation6_spill]] %s2165_s29  ;;  %s2167_s0 = smov (!%p37_p0, %s39_s0), %s1744_s27 }
  0x10   : > { %p604_p3 = pnand %p1495_p1, %p603_p2  ;;  %p41_p4 = scmp.ge.s32.totalorder %s2167_s0, 10 }
  0x11   : > { %p698_p5 = scmp.lt.s32.totalorder (!%p604_p3), %s1736_s25, 9  ;;  %p703_p6 = scmp.lt.s32.totalorder (!%p604_p3), %s1732_s24, 1 }
  0x12   : > { %s2169_s0 = smov (%p41_p4, %s2167_s0), 0  ;;  %607 = sbr.rel (%p604_p3) target bundleno = 2354 (0x932), region = 88 }
  0x13   : > { %2139 = sst [smem:[#allocation7_spill]] %s2169_s0 }
  0x14   : > { %s2140_s20 = sld [smem:[#allocation8_spill]] (!%p604_p3) }
  0x15   : > { %s2142_s5 = sld [smem:[#allocation12_spill]] (!%p604_p3) }
  0x16   : > { %s2143_s7 = sld [smem:[#allocation13_spill]] (!%p604_p3) }
  0x17   : > { %s2171_s25 = smov (!%p698_p5, %s1736_s25), 9 }
  0x18   : > { %s1881_s30 = scalar_select %p703_p6, %s1732_s24, 1 }
  0x19   : > { %s1608_s18 = sshll.u32 %s2171_s25, 3 }
  0x1a   : > { %s702_s21 = scalar_lea.vmem %s2140_s20, %s1608_s18  ;;  %s1609_s28 = sshll.u32 %s1881_s30, 4 }
  0x1b   : > { %s1898_s2 = scalar_lea.vmem %s2142_s5, %s1609_s28  ;;  %s1924_s25 = scalar_lea.vmem %s2113_s11, %s1609_s28 }
  0x1c   : > { %s1907_s20 = scalar_lea.vmem %s2143_s7, %s1609_s28  ;;  %s1612_s7 = sshll.u32 %s1881_s30, 5 }
  0x1d   : > { %s746_s27 = scalar_lea.vmem %s2116_s14, %s1881_s30  ;;  %s1938_s0 = scalar_lea.vmem %s2115_s13, %s1612_s7 }
  0x1e   : > { %s2144_s5 = sld [smem:[#allocation16_spill]] }
  0x1f   : > { %s2145_s28 = sld [smem:[#allocation2_spill]] }
  0x24   : > { %s1943_s4 = scalar_lea.vmem %s2144_s5, %s1608_s18 }
  0x25   : > { %p1507_p7 = scmp.ne.s32.totalorder %s2145_s28, 0 }
  0x26   : > { %s2146_s1 = sld [smem:[#allocation10_spill]] (!%p1507_p7) }
  0x27   : > { %755 = sbr.rel (%p1507_p7) target bundleno = 210 (0xd2), region = 92  ;;  %s2147_s17 = sld [smem:[#allocation9_spill]] (!%p1507_p7) }
  0x2c   : > { %v1620_v0 = vld [vmem:[%s2146_s1 + $0x38] sm:$0xff]  ;;  %v1619_v2 = vld [vmem:[%s2146_s1 + $0x30] sm:$0xff]  ;;  %v1618_v4 = vld [vmem:[%s2146_s1 + $0x28] sm:$0xff]  ;;  %vm860_vm0 = vcmask 523264   ;;  %vm890_vm1 = vcmask 261120  }
  0x2d   : > { %v1624_v1 = vld [vmem:[%s2146_s1 + $0x58] sm:$0xff]  ;;  %864 = vmatpush.bf16.msra.mxu0 %v1620_v0  ;;  %v1623_v3 = vld [vmem:[%s2146_s1 + $0x50] sm:$0xff]  ;;  %v1622_v5 = vld [vmem:[%s2146_s1 + $0x48] sm:$0xff] }
  0x2e   : > { %881 = vmatpush.bf16.msra.mxu1 %v1624_v1  ;;  %v756_v6 = vld [vmem:[%s702_s21] sm:$0xff]  ;;  %v1616_v10 = vld [vmem:[%s2146_s1 + $0x18] sm:$0xff]  ;;  %v1615_v12 = vld [vmem:[%s2146_s1 + $0x10] sm:$0xff] }
  0x2f   : > { %v1617_v7 = vld [vmem:[%s2146_s1 + $0x20] sm:$0xff]  ;;  %v784_v8 = vunpack.c.h.b16 %v756_v6  ;;  %v1614_v13 = vld [vmem:[%s2146_s1 + $0x8] sm:$0xff]  ;;  %v783_v14 = vunpack.c.l.b16 %v756_v6 }
  0x30   : > { %v1621_v9 = vld [vmem:[%s2146_s1 + $0x40] sm:$0xff] }
  0x31   : > { %865 = vmatpush.bf16.msra.mxu0 %v1619_v2  ;;  %v786_v11 = vpack.c.b16 %v784_v8, %v784_v8  ;;  %v1613_v15 = vld [vmem:[%s2146_s1] sm:$0xff]  ;;  %v785_v16 = vpack.c.b16 %v783_v14, %v783_v14 }
  0x32   : > { %882 = vmatpush.bf16.msra.mxu1 %v1623_v3  ;;  %v781_v19 = vld [vmem:[%s2147_s17] sm:$0xff] }
  0x35   : > { %866 = vmatpush.bf16.msra.mxu0 %v1618_v4 }
  0x36   : > { %883 = vmatpush.bf16.msra.mxu1 %v1622_v5 }
  0x39   : > { %867 = vmatpush.bf16.msra.mxu0 %v1617_v7 }
  0x3a   : > { %884 = vmatpush.bf16.msra.mxu1 %v1621_v9 }
  0x3d   : > { %868 = vmatpush.bf16.msra.mxu0 %v1616_v10  ;;  %1556 = vmatmul.msk.bf16.vlgmr.msra.gmra.mxu1 %vm860_vm0, %v786_v11 }
  0x41   : > { %869 = vmatpush.bf16.msra.mxu0 %v1615_v12 }
  0x45   : > { %870 = vmatpush.bf16.msra.mxu0 %v1614_v13 }
  0x49   : > { %871 = vmatpush.bf16.msra.mxu0 %v1613_v15 }
  0x4c   : > { %872 = vmatmul.bf16.vlgmr.msra.gmra.mxu0 %v785_v16 }
  0xba   : > { %v886_v17 = vpop.f32.mrf.mxu1 }
  0xc2   : > { %v888_v18 = vpop.f32.mrf.mxu1 }
  0xc9   : > { %v873_v20 = vpop.f32.mrf.mxu0 }
  0xca   : > { %v874_v21 = vadd.f32 %v873_v20, %v781_v19 }
  0xcc   : > { %v887_v22 = vadd.f32 %v886_v17, %v874_v21 }
  0xce   : > { %891 = vst.msk [vmem:[%s1943_s4] sm:$0xff] %vm890_vm1, %v887_v22 }
  0xd1   : > { %v875_v23 = vpop.f32.mrf.mxu0 }
  0xd2 PF: > { %vm895_vm2 = vcmask 261120   ;;  %v1750_v26 = vmov 32.0   ;;  %v1626_v38 = vld [vmem:[%s1898_s2 + $0x8] sm:$0xff]  ;;  %v1625_v39 = vld [vmem:[%s1898_s2] sm:$0xff]  ;;  %s2148_s2 = scalar_lea.vmem %s2105_s3, %s1881_s30  ;;  %s2149_s23 = sld [smem:[#allocation11_spill]]  ;;  %vm977_vm7 = vcmask 130048   ;;  %v970_v2 = vlaneseq }
  0xd3   : > { %1690 = vrcp.f32 %v1750_v26  ;;  %963 = vmatpush.bf16.msra.mxu0 %v1626_v38  ;;  %v1682_v49 = vld [vmem:[%s2148_s2] ss:$0 sm:$0xff]  ;;  %s2151_s5 = scalar_lea.vmem %s2108_s6, %s1881_s30  ;;  %s1751_s18 = smov 112   ;;  %vm999_vm9 = vcmask 64512   ;;  %vm1017_vm10 = vcmask 1043456   ;;  %v1628_v38 = vld [vmem:[%s1907_s20 + $0x8] sm:$0xff] }
  0xd4   : > { %v1684_v56 = vld [vmem:[%s2151_s5] ss:$0 sm:$0xff]  ;;  %s1752_s29 = smov 96   ;;  %s1753_s15 = smov 80   ;;  %v971_v3 = vand.u32 127, %v970_v2  ;;  %vm1250_vm14 = vcmask 523264  }
  0xd5   : > { %v1987_v24 = vld [vmem:[%s1943_s4] sm:$0xff]  ;;  %s1754_s16 = smov 48   ;;  %s1755_s17 = smov 64  }
  0xd6   : > { %v896_v25 = vsel %vm895_vm2, %v1987_v24, 0.0  ;;  %vm972_vm8 = vcmp.lt.s32.totalorder %v971_v3, 5  ;;  %s1756_s28 = smov 16   ;;  %s2152_s19 = scalar_lea.vmem %s2110_s8, %s1881_s30 }
  0xd7   : > { %897 = vadd.xlane.f32.xlu0 %v896_v25  ;;  %964 = vmatpush.bf16.msra.mxu0 %v1625_v39  ;;  %v1627_v39 = vld [vmem:[%s1907_s20] sm:$0xff]  ;;  %s2153_s22 = scalar_lea.vmem %s2111_s9, %s1881_s30  ;;  %s2154_s7 = scalar_lea.vmem %s2112_s10, %s1881_s30 }
  0xd8   : > { %s2150_s21 = scalar_lea.vmem %s2149_s23, %s1881_s30 }
  0xd9   : > { %v1691_v27 = vpop.eup %1690  ;;  %v1683_v52 = vld [vmem:[%s2150_s21] ss:$0 sm:$0xff] }
  0xda   : > { %v900_v28 = vmul.f32 32.0, %v1691_v27  ;;  %vm904_vm3 = vweird.f32 %v1691_v27 }
  0xdb   : > { %1127 = vmatpush.bf16.msrb.mxu0 %v1628_v38 }
  0xdc   : > { %v901_v29 = vsub.f32 1.0, %v900_v28 }
  0xde   : > { %v902_v30 = vmul.f32 %v1691_v27, %v901_v29 }
  0xdf   : > { %1128 = vmatpush.bf16.msrb.mxu0 %v1627_v39 }
  0xe0   : > { %v903_v31 = vadd.f32 %v1691_v27, %v902_v30 }
  0xe2   : > { %v1991_v32 = vsel %vm904_vm3, %v1691_v27, %v903_v31 }
 0x14a   : > { %v898_v33 = vpop.xlane.xlu0 %897 }
 0x14b   : > { %v906_v34 = vmul.f32 %v1991_v32, %v898_v33 }
 0x14d   : > { %v907_v35 = vsub.f32 %v1987_v24, %v906_v34 }
 0x14f   : > { %v908_v36 = vmul.f32 %v907_v35, %v907_v35 }
 0x151   : > { %v909_v37 = vsel %vm895_vm2, %v908_v36, 0.0 }
 0x152   : > { %910 = vadd.xlane.f32.xlu0 %v909_v37 }
 0x1c5   : > { %v911_v40 = vpop.xlane.xlu0 %910 }
 0x1c6   : > { %v912_v41 = vmul.f32 %v911_v40, %v1991_v32 }
 0x1c8   : > { %v913_v42 = vadd.f32 1e-06, %v912_v41 }
 0x1ca   : > { %1692 = vrsqrt.f32 %v913_v42  ;;  %vm920_vm5 = vweird.f32 %v913_v42 }
 0x1d0   : > { %v1693_v43 = vpop.eup %1692 }
 0x1d1   : > { %v915_v44 = vmul.f32 %v1693_v43, %v913_v42  ;;  %vm921_vm4 = vweird.f32 %v1693_v43 }
 0x1d2   : > { %vm922_vm6 = vmor %vm920_vm5, %vm921_vm4 }
 0x1d3   : > { %v916_v45 = vmul.f32 %v1693_v43, %v915_v44 }
 0x1d5   : > { %v917_v46 = vmul.f32 0.5, %v916_v45 }
 0x1d7   : > { %v918_v47 = vsub.f32 1.5, %v917_v46 }
 0x1d9   : > { %v919_v48 = vmul.f32 %v1693_v43, %v918_v47  ;;  %v1685_v47 = vld [vmem:[%s2152_s19] ss:$0 sm:$0xff] }
 0x1db   : > { %v923_v50 = vsel %vm922_vm6, %v1693_v43, %v919_v48 }
 0x1dc   : > { %v924_v51 = vmul.f32 %v923_v50, %v907_v35 }
 0x1de   : > { %v928_v53 = vmul.f32 %v1682_v49, %v924_v51 }
 0x1e0   : > { %v932_v54 = vadd.f32 %v1683_v52, %v928_v53 }
 0x1e2   : > { %v933_v55 = vpack.c.bf16 %v932_v54, %v932_v54 }
 0x1e4   : > { %1565 = vmatmul.msk.bf16.vlgmr.msra.gmra.mxu0 %vm895_vm2, %v933_v55 }
 0x261   : > { %v966_v57 = vpop.f32.mrf.mxu0 }
 0x262   : > { %v967_v58 = vadd.f32 %v1684_v56, %v966_v57 }
 0x264   : > { %v973_v59 = vpack.c.bf16 %v967_v58, %v967_v58  ;;  %v1630_v58 = vld [vmem:[%s1924_s25 + $0x8] sm:$0xff] }
 0x266   : > { %1034 = vrot.lane.b32.xlu2 %v973_v59, %s1751_s18  ;;  %975 = vrot.lane.b32.xlu1 %v973_v59, %s1752_s29  ;;  %s2155_s18 = scalar_lea.vmem %s2114_s12, %s1881_s30 }
 0x269   : > { %v968_v60 = vpop.f32.mrf.mxu0 }
 0x26e   : > { %1036 = vrot.lane.b32.xlu1 %v973_v59, %s1753_s15  ;;  %s2156_s15 = sld [smem:[#allocation2_spill]] }
 0x274   : > { %p1605_p8 = scmp.ne.s32.totalorder %s2156_s15, 1 }
 0x275   : > { %s2158_s24 = sld [smem:[#allocation15_spill]] (!%p1605_p8) }
 0x2c0   : > { %v1035_v1 = vpop.permute.xlu2 %1034 }
 0x2d8   : > { %v976_v61 = vpop.permute.xlu1 %975 }
 0x2d9   : > { %v982_v62 = vsel %vm977_vm7, %v976_v61, 0 }
 0x2da   : > { %991 = vmatpush.bf16.xpose.msra.mxu1 %v982_v62 }
 0x2e0   : > { %v1037_v63 = vpop.permute.xlu1 %1036 }
 0x2e1   : > { %1566 = vmatmul.msk.bf16.vlgmr.msra.gmra.mxu1 %vm977_vm7, %v973_v59  ;;  %v1042_v0 = vsel %vm977_vm7, %v1037_v63, 0 }
 0x2e2   : > { %1051 = vmatpush.bf16.xpose.msra.mxu3 %v1042_v0  ;;  %1197 = vmatpush.bf16.msrb.mxu1 %v1630_v58 }
 0x2e9   : > { %1568 = vmatmul.msk.bf16.vlgmr.msra.gmra.mxu3 %vm977_vm7, %v1035_v1 }
 0x35e   : > { %v993_v4 = vpop.f32.mrf.mxu1 }
 0x35f   : > { %v997_v5 = vmul.f32 0.25, %v993_v4  ;;  %v1686_v4 = vld [vmem:[%s2153_s22] ss:$0 sm:$0xff] }
 0x361   : > { %v998_v6 = vsel %vm972_vm8, %v997_v5, -1e+09 }
 0x362   : > { %v1000_v7 = vsel %vm999_vm9, %v998_v6, -inf }
 0x363   : > { %1001 = vmax.xlane.f32.xlu2 %v1000_v7  ;;  %v1687_v7 = vld [vmem:[%s2154_s7] ss:$0 sm:$0xff] }
 0x366   : > { %v995_v8 = vpop.f32.mrf.mxu1 }
 0x36c   : > { %v1053_v9 = vpop.f32.mrf.mxu3 }
 0x36d   : > { %v1057_v10 = vmul.f32 0.25, %v1053_v9 }
 0x36f   : > { %v1058_v11 = vsel %vm972_vm8, %v1057_v10, -1e+09 }
 0x370   : > { %v1059_v12 = vsel %vm999_vm9, %v1058_v11, -inf }
 0x371   : > { %1060 = vmax.xlane.f32.xlu0 %v1059_v12  ;;  %v1633_v12 = vld [vmem:[%s1938_s0 + $0x10] sm:$0xff] }
 0x374   : > { %v1055_v13 = vpop.f32.mrf.mxu3 }
 0x375   : > { %v1632_v13 = vld [vmem:[%s1938_s0 + $0x8] sm:$0xff] }
 0x37b   : > { %1071 = vrot.lane.b32.xlu2 %v973_v59, %s1754_s16  ;;  %s2157_s16 = sld [smem:[#allocation14_spill]] (!%p1605_p8) }
 0x385   : > { %1012 = vrot.lane.b32.xlu0 %v973_v59, %s1755_s17  ;;  %v1629_v59 = vld [vmem:[%s1924_s25] sm:$0xff] }
 0x386   : > { %1198 = vmatpush.bf16.msrb.mxu1 %v1629_v59 }
 0x3d6   : > { %v1002_v14 = vpop.xlane.xlu2 %1001 }
 0x3d7   : > { %v1003_v15 = vsub.f32 %v998_v6, %v1002_v14  ;;  %v1631_v14 = vld [vmem:[%s1938_s0] sm:$0xff] }
 0x3d9   : > { %v1004_v16 = vmul.f32 1.442695, %v1003_v15  ;;  %v1688_v15 = vld [vmem:[%s2155_s18] ss:$0 sm:$0xff] }
 0x3db   : > { %1694 = vpow2.f32 %v1004_v16 }
 0x3de   : > { %v1072_v25 = vpop.permute.xlu2 %1071 }
 0x3df   : > { %v1077_v28 = vsel %vm1017_vm10, %v1072_v25, 0 }
 0x3e1   : > { %v1695_v17 = vpop.eup %1694 }
 0x3e2   : > { %v1006_v18 = vsel %vm999_vm9, %v1695_v17, 0.0 }
 0x3e3   : > { %1007 = vadd.xlane.f32.xlu1 %v1006_v18 }
 0x3e4   : > { %v1061_v19 = vpop.xlane.xlu0 %1060 }
 0x3e5   : > { %v1062_v20 = vsub.f32 %v1058_v11, %v1061_v19  ;;  %v1634_v11 = vld [vmem:[%s1938_s0 + $0x18] sm:$0xff] }
 0x3e6   : > { %1258 = vmatpush.bf16.msrb.mxu3 %v1634_v11 }
 0x3e7   : > { %v1063_v21 = vmul.f32 1.442695, %v1062_v20 }
 0x3e9   : > { %1696 = vpow2.f32 %v1063_v21 }
 0x3ea   : > { %1259 = vmatpush.bf16.msrb.mxu3 %v1633_v12 }
 0x3ee   : > { %1260 = vmatpush.bf16.msrb.mxu3 %v1632_v13 }
 0x3ef   : > { %v1697_v22 = vpop.eup %1696 }
 0x3f0   : > { %v1065_v23 = vsel %vm999_vm9, %v1697_v22, 0.0 }
 0x3f1   : > { %1066 = vadd.xlane.f32.xlu0 %v1065_v23 }
 0x3f2   : > { %1261 = vmatpush.bf16.msrb.mxu3 %v1631_v14 }
 0x3f7   : > { %v1013_v26 = vpop.permute.xlu0 %1012 }
 0x3f8   : > { %v1019_v27 = vsel %vm1017_vm10, %v1013_v26, 0 }
 0x3f9   : > { %1028 = vmatpush.bf16.msra.mxu2 %v1019_v27 }
 0x3fd   : > { %1086 = vmatpush.bf16.msrb.mxu2 %v1077_v28 }
 0x456   : > { %v1008_v29 = vpop.xlane.xlu1 %1007 }
 0x457   : > { %1698 = vrcp.f32 %v1008_v29 }
 0x45d   : > { %v1699_v30 = vpop.eup %1698 }
 0x45e   : > { %v1010_v31 = vmul.f32 %v1699_v30, %v1695_v17  ;;  %v1689_v30 = vld [vmem:[%s746_s27] ss:$0 sm:$0xff] }
 0x460   : > { %v1011_v33 = vpack.c.bf16 %v1010_v31, %v1010_v31 }
 0x462   : > { %1567 = vmatmul.msk.bf16.vlgmr.msra.gmra.mxu2 %vm999_vm9, %v1011_v33 }
 0x464   : > { %v1067_v34 = vpop.xlane.xlu0 %1066 }
 0x465   : > { %1700 = vrcp.f32 %v1067_v34 }
 0x46b   : > { %v1701_v35 = vpop.eup %1700 }
 0x46c   : > { %v1069_v36 = vmul.f32 %v1701_v35, %v1697_v22 }
 0x46e   : > { %v1070_v37 = vpack.c.bf16 %v1069_v36, %v1069_v36 }
 0x472   : > { %1569 = vmatmul.msk.bf16.vlgmr.msrb.gmra.mxu2 %vm999_vm9, %v1070_v37 }
 0x4e5   : > { %v1030_v40 = vpop.f32.mrf.mxu2 }
 0x4ed   : > { %v1032_v41 = vpop.f32.mrf.mxu2 }
 0x4f5   : > { %v1088_v42 = vpop.f32.mrf.mxu2 }
 0x4f6   : > { %1093 = vrot.lane.b32.xlu1 %v1088_v42, %s1756_s28 }
 0x4fd   : > { %v1090_v43 = vpop.f32.mrf.mxu2 }
 0x568   : > { %v1094_v44 = vpop.permute.xlu1 %1093 }
 0x569   : > { %v1096_v45 = vsel %vm977_vm7, %v1030_v40, %v1094_v44 }
 0x56a   : > { %v1097_v46 = vpack.c.bf16 %v1096_v45, %v1096_v45 }
 0x56c   : > { %1578 = vmatmul.msk.bf16.vlgmr.msrb.gmra.mxu0 %vm895_vm2, %v1097_v46 }
 0x5e9   : > { %v1130_v48 = vpop.f32.mrf.mxu0 }
 0x5ea   : > { %v1131_v49 = vadd.f32 %v1685_v47, %v1130_v48 }
 0x5ec   : > { %v2035_v50 = vadd.f32 %v1131_v49, %v1987_v24 }
 0x5ee   : > { %v1137_v51 = vsel %vm895_vm2, %v2035_v50, 0.0 }
 0x5ef   : > { %1138 = vadd.xlane.f32.xlu2 %v1137_v51 }
 0x5f1   : > { %v1132_v52 = vpop.f32.mrf.mxu0 }
 0x662   : > { %v1139_v53 = vpop.xlane.xlu2 %1138 }
 0x663   : > { %v1140_v54 = vmul.f32 %v1139_v53, %v1991_v32 }
 0x665   : > { %v1141_v55 = vsub.f32 %v2035_v50, %v1140_v54 }
 0x667   : > { %v1142_v56 = vmul.f32 %v1141_v55, %v1141_v55 }
 0x669   : > { %v1143_v57 = vsel %vm895_vm2, %v1142_v56, 0.0 }
 0x66a   : > { %1144 = vadd.xlane.f32.xlu1 %v1143_v57 }
 0x6dd   : > { %v1145_v24 = vpop.xlane.xlu1 %1144 }
 0x6de   : > { %v1146_v60 = vmul.f32 %v1145_v24, %v1991_v32 }
 0x6e0   : > { %v1147_v61 = vadd.f32 1e-06, %v1146_v60 }
 0x6e2   : > { %1702 = vrsqrt.f32 %v1147_v61  ;;  %vm1154_vm12 = vweird.f32 %v1147_v61 }
 0x6e8   : > { %v1703_v62 = vpop.eup %1702 }
 0x6e9   : > { %v1149_v63 = vmul.f32 %v1703_v62, %v1147_v61  ;;  %vm1155_vm11 = vweird.f32 %v1703_v62 }
 0x6ea   : > { %vm1156_vm13 = vmor %vm1154_vm12, %vm1155_vm11 }
 0x6eb   : > { %v1150_v0 = vmul.f32 %v1703_v62, %v1149_v63 }
 0x6ed   : > { %v1151_v1 = vmul.f32 0.5, %v1150_v0 }
 0x6ef   : > { %v1152_v2 = vsub.f32 1.5, %v1151_v1 }
 0x6f1   : > { %v1153_v3 = vmul.f32 %v1703_v62, %v1152_v2 }
 0x6f3   : > { %v1157_v5 = vsel %vm1156_vm13, %v1703_v62, %v1153_v3 }
 0x6f4   : > { %v1158_v6 = vmul.f32 %v1157_v5, %v1141_v55 }
 0x6f6   : > { %v1162_v8 = vmul.f32 %v1686_v4, %v1158_v6 }
 0x6f8   : > { %v1166_v9 = vadd.f32 %v1687_v7, %v1162_v8 }
 0x6fa   : > { %v1167_v10 = vpack.c.bf16 %v1166_v9, %v1166_v9 }
 0x6fc   : > { %1587 = vmatmul.msk.bf16.vlgmr.msrb.gmra.mxu1 %vm895_vm2, %v1167_v10 }
 0x779   : > { %v1200_v16 = vpop.f32.mrf.mxu1 }
 0x77a   : > { %v1201_v17 = vadd.f32 %v1688_v15, %v1200_v16 }
 0x77c   : > { %v1204_v18 = vmul.f32 %v1201_v17, %v1201_v17 }
 0x77e   : > { %v1205_v19 = vmul.f32 %v1204_v18, %v1201_v17 }
 0x780   : > { %v1206_v20 = vmul.f32 0.044715, %v1205_v19 }
 0x781   : > { %v1202_v21 = vpop.f32.mrf.mxu1 }
 0x782   : > { %v1207_v22 = vadd.f32 %v1206_v20, %v1201_v17 }
 0x784   : > { %v1208_v23 = vmul.f32 0.7978846, %v1207_v22 }
 0x786   : > { %1704 = vtanh.f32 %v1208_v23 }
 0x78c   : > { %v1705_v25 = vpop.eup %1704 }
 0x78d   : > { %v1210_v26 = vadd.f32 1.0, %v1705_v25 }
 0x78f   : > { %v1211_v27 = vmul.f32 0.5, %v1210_v26 }
 0x791   : > { %v1212_v28 = vmul.f32 %v1211_v27, %v1201_v17 }
 0x793   : > { %v1213_v29 = vpack.c.bf16 %v1212_v28, %v1212_v28 }
 0x795   : > { %1604 = vmatmul.msk.bf16.vlgmr.msrb.gmra.mxu3 %vm1250_vm14, %v1213_v29 }
 0x818   : > { %v1263_v31 = vpop.f32.mrf.mxu3 }
 0x819   : > { %v1264_v33 = vadd.f32 %v1689_v30, %v1263_v31 }
 0x81b   : > { %v1267_v34 = vadd.f32 %v1264_v33, %v2035_v50 }
 0x81c   : > { %1272 = sbr.rel (%p1605_p8) target bundleno = 2354 (0x932), region = 96 }
 0x81d   : > { %1268 = vst.msk [vmem:[%s1943_s4] sm:$0xff] %vm895_vm2, %v1267_v34 }
 0x820   : > { %v1265_v35 = vpop.f32.mrf.mxu3 }
 0x821   : > { %v1706_v52 = vld [vmem:[%s2157_s16] ss:$0 sm:$0xff] }
 0x824   : > { %v1273_v36 = vld [vmem:[%s1943_s4] sm:$0xff] }
 0x825   : > { %v1276_v37 = vsel %vm895_vm2, %v1273_v36, 0.0 }
 0x826   : > { %1277 = vadd.xlane.f32.xlu0 %v1276_v37 }
 0x899   : > { %v1278_v38 = vpop.xlane.xlu0 %1277 }
 0x89a   : > { %v1279_v39 = vmul.f32 %v1278_v38, %v1991_v32 }
 0x89c   : > { %v1280_v40 = vsub.f32 %v1273_v36, %v1279_v39 }
 0x89e   : > { %v1281_v41 = vmul.f32 %v1280_v40, %v1280_v40 }
 0x8a0   : > { %v1282_v42 = vsel %vm895_vm2, %v1281_v41, 0.0 }
 0x8a1   : > { %1283 = vadd.xlane.f32.xlu0 %v1282_v42 }
 0x914   : > { %v1284_v43 = vpop.xlane.xlu0 %1283 }
 0x915   : > { %v1285_v44 = vmul.f32 %v1284_v43, %v1991_v32  ;;  %v1707_v32 = vld [vmem:[%s2158_s24] ss:$0 sm:$0xff] }
 0x917   : > { %v1286_v45 = vadd.f32 1e-06, %v1285_v44 }
 0x919   : > { %1708 = vrsqrt.f32 %v1286_v45  ;;  %vm1293_vm0 = vweird.f32 %v1286_v45 }
 0x91f   : > { %v1709_v46 = vpop.eup %1708 }
 0x920   : > { %v1288_v47 = vmul.f32 %v1709_v46, %v1286_v45  ;;  %vm1294_vm15 = vweird.f32 %v1709_v46 }
 0x921   : > { %vm1295_vm1 = vmor %vm1293_vm0, %vm1294_vm15 }
 0x922   : > { %v1289_v48 = vmul.f32 %v1709_v46, %v1288_v47 }
 0x924   : > { %v1290_v49 = vmul.f32 0.5, %v1289_v48 }
 0x926   : > { %v1291_v50 = vsub.f32 1.5, %v1290_v49 }
 0x928   : > { %v1292_v51 = vmul.f32 %v1709_v46, %v1291_v50 }
 0x92a   : > { %v1296_v53 = vsel %vm1295_vm1, %v1709_v46, %v1292_v51 }
 0x92b   : > { %v1297_v54 = vmul.f32 %v1296_v53, %v1280_v40 }
 0x92d   : > { %v1301_v55 = vmul.f32 %v1706_v52, %v1297_v54 }
 0x92f   : > { %v1305_v56 = vadd.f32 %v1707_v32, %v1301_v55 }
 0x931   : > { %1306 = vst.msk [vmem:[%s1943_s4] sm:$0xff] %vm895_vm2, %v1305_v56 }
 0x932 PF: > { %s2159_s2 = sld [smem:[#allocation5_spill]] }
 0x933   : > { %s2160_s24 = sld [smem:[#allocation3_spill]] }
 0x934   : > { %s2161_s25 = sld [smem:[#allocation4_spill]] }
 0x935   : > { %s2162_s26 = sld [smem:[#allocation6_spill]] }
 0x936   : > { %s2163_s27 = sld [smem:[#allocation7_spill]] }
 0x938   : > { %s27_s28 = sadd.s32 1, %s2159_s2  }
 0x939   : > { %p24_p9 = scmp.ge.s32.totalorder %s27_s28, 22  }
 0x93b   :  { %26 = sbr.rel (!%p24_p9) target bundleno = 10 (0xa), region = 162 }

</bundles_post_ra>
